<compile_context>
chip_gen: v5e
topology: v5e:2x2
jax: 0.10.0
libtpu: 0.0.40
codegen_flags: <defaults>
</compile_context>

<pallas_src>
import math

import numpy as np
import jax
import jax.numpy as jnp
from jax.experimental import pallas as pl
from jax.experimental.pallas import tpu as pltpu


# ------------------------------- helpers --------------------------------------
def _round_up(x, m):
    return ((x + m - 1) // m) * m


# ----------------------------- Pallas kernel ----------------------------------
def _gcmc_kernel(tb_ref,       # (num_tiles,)      i32  SMEM: dst block of each edge tile
                 review_ref,   # (tile_e, d_pad)   bf16 edge review features (sorted/padded)
                 h_ref,        # (tile_e, d_pad)   f32  gathered src features  (sorted/padded)
                 cj_ref,       # (tile_e, 1)       f32  gathered cj[src]
                 dst_ref,      # (1, tile_e)       i32  dst indices (lane-dense)
                 w_rw_ref,     # (d_pad, d_pad)    bf16 review_w.T (zero-padded)
                 w_pr_ref,     # (d_pad, 128)      bf16 col0 = prob_score, col1 = review_score
                 ci_ref,       # (tile_dst, 1)     f32  ci for this dst block
                 out_ref):     # (tile_dst, d_pad) f32  resident accumulator / output block
    t = pl.program_id(0)
    n_t = pl.num_programs(0)
    blk = tb_ref[t]
    prev_blk = tb_ref[jnp.maximum(t - 1, 0)]
    next_blk = tb_ref[jnp.minimum(t + 1, n_t - 1)]
    is_first = jnp.logical_or(t == 0, blk != prev_blk)   # first tile of this dst block
    is_last = jnp.logical_or(t == n_t - 1, blk != next_blk)

    @pl.when(is_first)
    def _init():
        out_ref[...] = jnp.zeros_like(out_ref)

    # Edge linears on the MXU (bf16 operands, f32 results).  Pad rows/cols of the weights
    # are zero, so the pad lanes of rf are exactly 0 -> no lane masking needed.
    review = review_ref[...]
    rf = jnp.dot(review, w_rw_ref[...], preferred_element_type=jnp.float32)      # (tile_e, d_pad)
    logits = jnp.dot(review, w_pr_ref[...], preferred_element_type=jnp.float32)  # (tile_e, 128)
    pa = jax.nn.sigmoid(logits[:, 0:1])
    ra = jax.nn.sigmoid(logits[:, 1:2])

    # TODO(synk): dropout on cj omitted (module is built with dropout_rate=0.0 -> identity).
    msg = (h_ref[...] * pa + rf * ra) * cj_ref[...]                              # (tile_e, d_pad) f32

    # Scatter-sum onto this dst block with a one-hot MXU matmul, kept entirely in f32
    # (exact 0/1 one-hot, f32 accumulation).  Padded edge slots have msg == 0.
    tile_dst = out_ref.shape[0]
    tile_e = dst_ref.shape[1]
    dst_local = dst_ref[...] - blk * tile_dst                                    # (1, tile_e)
    dst_oh = (jax.lax.broadcasted_iota(jnp.int32, (tile_dst, tile_e), 0)
              == dst_local).astype(jnp.float32)                                  # (tile_dst, tile_e)
    out_ref[...] += jnp.dot(dst_oh, msg, preferred_element_type=jnp.float32)

    @pl.when(is_last)
    def _finalize():
        out_ref[...] = out_ref[...] * ci_ref[...]


# ------------------------------- wrapper ---------------------------------------
def gcmc_graph_conv(review_feat, weight, w_prob, w_rev, w_rw, cj, ci, src_idx, dst_idx,
                    *, max_tile_e=1024, max_tile_dst=256):
    E, D = review_feat.shape
    n_dst = ci.shape[0]

    d_pad = _round_up(D, 128)
    tile_dst = min(max_tile_dst, _round_up(n_dst, 128))
    n_dst_pad = _round_up(n_dst, tile_dst)
    n_dst_blocks = n_dst_pad // tile_dst
    tile_e = min(max_tile_e, _round_up(E, 128))     # pick the tile first, then pad per block

    # ---- per-edge src gathers done once with XLA (replaces the O(E*n_src) in-kernel one-hot
    # ---- gather and the VMEM-resident node table) ----------------------------------------
    src_idx = src_idx.astype(jnp.int32)
    dst_idx = dst_idx.astype(jnp.int32)
    h_src = jnp.take(weight.astype(jnp.float32), src_idx, axis=0)                 # (E, D)
    cj_e = jnp.take(cj.reshape(-1).astype(jnp.float32), src_idx, axis=0)          # (E,)

    # ---- group edges by destination block (host-side metadata; each block gets >=1 tile
    # ---- so every output block is visited, zero-initialised and scaled by ci) ------------
    dst_np = np.asarray(jax.device_get(dst_idx))
    order_np = np.argsort(dst_np, kind="stable")
    blk_of_edge = dst_np[order_np] // tile_dst
    counts = np.bincount(blk_of_edge, minlength=n_dst_blocks)
    tiles_per_block = np.maximum(1, -(-counts // tile_e))
    num_tiles = int(tiles_per_block.sum())
    tile_off = np.concatenate(([0], np.cumsum(tiles_per_block)))[:-1]
    edge_off = tile_off * tile_e
    edge_start = np.concatenate(([0], np.cumsum(counts)))[:-1]
    slot_np = edge_off[blk_of_edge] + (np.arange(E) - edge_start[blk_of_edge])
    tile_block_np = np.repeat(np.arange(n_dst_blocks), tiles_per_block).astype(np.int32)
    e_buf = num_tiles * tile_e

    order = jnp.asarray(order_np.astype(np.int32))
    slots = jnp.asarray(slot_np.astype(np.int32))
    tile_block = jnp.asarray(tile_block_np)

    # Padded slots stay all-zero -> their message is exactly 0 and cannot corrupt any row.
    review_buf = (jnp.zeros((e_buf, d_pad), jnp.bfloat16)
                  .at[slots, :D].set(review_feat[order].astype(jnp.bfloat16)))
    h_buf = jnp.zeros((e_buf, d_pad), jnp.float32).at[slots, :D].set(h_src[order])
    cj_buf = jnp.zeros((e_buf, 1), jnp.float32).at[slots, 0].set(cj_e[order])
    dst_buf = jnp.zeros((1, e_buf), jnp.int32).at[0, slots].set(dst_idx[order])

    f32 = jnp.float32
    w_rw_pad = (jnp.zeros((d_pad, d_pad), f32)
                .at[:D, :D].set(w_rw.T.astype(f32))
                .astype(jnp.bfloat16))
    w_pr = (jnp.zeros((d_pad, 128), f32)
            .at[:D, 0].set(w_prob.reshape(-1).astype(f32))
            .at[:D, 1].set(w_rev.reshape(-1).astype(f32))
            .astype(jnp.bfloat16))
    ci_pad = jnp.zeros((n_dst_pad, 1), f32).at[:n_dst, :].set(ci.astype(f32))

    flops = 2 * e_buf * d_pad * (d_pad + 128 + tile_dst)
    bytes_accessed = (e_buf * (6 * d_pad + 8)                 # review (bf16) + h (f32) + cj + dst
                      + 2 * d_pad * (d_pad + 128)             # weights (bf16), fetched once
                      + n_dst_pad * (8 * d_pad + 4)           # output r/w + ci
                      + 4 * num_tiles)                        # tile->block table

    grid_spec = pltpu.PrefetchScalarGridSpec(
        num_scalar_prefetch=1,
        grid=(num_tiles,),
        in_specs=[
            pl.BlockSpec((tile_e, d_pad), lambda t, tb: (t, 0)),       # review tiles (bf16)
            pl.BlockSpec((tile_e, d_pad), lambda t, tb: (t, 0)),       # gathered h[src] (f32)
            pl.BlockSpec((tile_e, 1), lambda t, tb: (t, 0)),           # gathered cj[src]
            pl.BlockSpec((1, tile_e), lambda t, tb: (0, t)),           # dst indices (lane-dense)
            pl.BlockSpec((d_pad, d_pad), lambda t, tb: (0, 0)),        # review_w.T (resident)
            pl.BlockSpec((d_pad, 128), lambda t, tb: (0, 0)),          # [prob | rev] weights
            pl.BlockSpec((tile_dst, 1), lambda t, tb: (tb[t], 0)),     # ci for this dst block
        ],
        out_specs=pl.BlockSpec((tile_dst, d_pad), lambda t, tb: (tb[t], 0)),
    )

    out_pad = pl.pallas_call(
        _gcmc_kernel,
        out_shape=jax.ShapeDtypeStruct((n_dst_pad, d_pad), jnp.float32),
        grid_spec=grid_spec,
        compiler_params=pltpu.CompilerParams(
            # Consecutive tiles accumulate into the same resident output block, so this
            # single grid axis must stay sequential.
            dimension_semantics=("arbitrary",),
            vmem_limit_bytes=48 * 1024 * 1024,
        ),
        cost_estimate=pl.CostEstimate(flops=flops, transcendentals=2 * e_buf,
                                      bytes_accessed=bytes_accessed),
    )(tile_block, review_buf, h_buf, cj_buf, dst_buf, w_rw_pad, w_pr, ci_pad)
    return out_pad[:n_dst, :D]


# ------------------------------ parameter init ---------------------------------
def xavier_uniform(key, shape):
    fan_out, fan_in = shape[0], shape[1]
    bound = math.sqrt(6.0 / (fan_in + fan_out))
    return jax.random.uniform(key, shape, jnp.float32, minval=-bound, maxval=bound)


# ------------------------------ JAX reference -----------------------------------
def reference(review_feat, weight, w_prob, w_rev, w_rw, cj, ci, src_idx, dst_idx):
    pa = jax.nn.sigmoid(review_feat @ w_prob.T)           # (E, 1)
    ra = jax.nn.sigmoid(review_feat @ w_rev.T)            # (E, 1)
    rf = review_feat @ w_rw.T                             # (E, D)
    h_src = weight[src_idx]                               # (E, D)
    cj_e = cj[src_idx]                                    # (E, 1)
    msg = (h_src * pa + rf * ra) * cj_e                   # (E, D)
    agg = jax.ops.segment_sum(msg, dst_idx, num_segments=ci.shape[0])
    return agg * ci


# ------------------------------------ main --------------------------------------
if __name__ == "__main__":
    in_feats = 24    # number of source nodes (self.weight has shape (in_feats, out_feats))
    out_feats = 32   # feature dim
    n_dst = 200      # destination nodes (spans two 128-row dst blocks at tile_dst=128)
    n_edges = 500

    root = jax.random.PRNGKey(0)
    k_w, k_p, k_r, k_rw, k_feat, k_cj, k_ci, k_src, k_dst = jax.random.split(root, 9)

    # Parameters (xavier_uniform, deterministic).
    weight = xavier_uniform(k_w, (in_feats, out_feats))        # self.weight
    w_prob = xavier_uniform(k_p, (1, out_feats))               # prob_score.weight
    w_rev = xavier_uniform(k_r, (1, out_feats))                # review_score.weight
    w_rw = xavier_uniform(k_rw, (out_feats, out_feats))        # review_w.weight

    # Graph data.
    review_feat = jax.random.normal(k_feat, (n_edges, out_feats), jnp.float32)
    cj = jax.random.uniform(k_cj, (in_feats, 1), jnp.float32)   # srcdata['cj']
    ci = jax.random.uniform(k_ci, (n_dst, 1), jnp.float32)      # dstdata['ci']
    src_idx = jax.random.randint(k_src, (n_edges,), 0, in_feats)
    dst_idx = jax.random.randint(k_dst, (n_edges,), 0, n_dst)

    # Small tiles so the toy problem still exercises the grouped multi-dst-block /
    # multi-tile-per-block paths (defaults are 1024 / 256 for realistic sizes).
    out = gcmc_graph_conv(review_feat, weight, w_prob, w_rev, w_rw, cj, ci,
                          src_idx, dst_idx, max_tile_e=128, max_tile_dst=128)
    out = jax.block_until_ready(out)

    ref = reference(review_feat, weight, w_prob, w_rev, w_rw, cj, ci, src_idx, dst_idx)
    assert out.shape == (n_dst, out_feats)
    # bf16 is only used for the edge-linear MXU operands; message + scatter stay in f32.
    assert jnp.allclose(out, ref, atol=2e-2, rtol=2e-2), "mismatch vs JAX reference"

    print("KERNEL_OK")
</pallas_src>

<mosaic_0001>
module attributes {stable_mosaic.version = 11 : i64} {
  func.func @_gcmc_kernel(%arg0: i32, %arg1: memref<5xi32, #tpu.memory_space<smem>>, %arg2: memref<128x128xbf16, #tpu.memory_space<vmem>>, %arg3: memref<128x128xf32, #tpu.memory_space<vmem>>, %arg4: memref<128x1xf32, #tpu.memory_space<vmem>>, %arg5: memref<1x128xi32, #tpu.memory_space<vmem>>, %arg6: memref<128x128xbf16, #tpu.memory_space<vmem>>, %arg7: memref<128x128xbf16, #tpu.memory_space<vmem>>, %arg8: memref<128x1xf32, #tpu.memory_space<vmem>>, %arg9: memref<128x128xf32, #tpu.memory_space<vmem>>) attributes {dimension_semantics = [#tpu.dimension_semantics<arbitrary>], iteration_bounds = array<i64: 5>, scalar_prefetch = 1 : i64, scratch_operands = 0 : i64, tpu.core_type = #tpu.core_type<tc>, window_params = [{transform_indices = @transform_0, window_bounds = array<i64: 128, 128>}, {transform_indices = @transform_1, window_bounds = array<i64: 128, 128>}, {transform_indices = @transform_2, window_bounds = array<i64: 128, 1>}, {transform_indices = @transform_3, window_bounds = array<i64: 1, 128>}, {pipeline_mode = #tpu.pipeline_mode<synchronous>, transform_indices = @transform_4, window_bounds = array<i64: 128, 128>}, {pipeline_mode = #tpu.pipeline_mode<synchronous>, transform_indices = @transform_5, window_bounds = array<i64: 128, 128>}, {transform_indices = @transform_6, window_bounds = array<i64: 128, 1>}, {transform_indices = @transform_7, window_bounds = array<i64: 128, 128>}]} {
    %0 = arith.index_cast %arg0 : i32 to index
    %1 = memref.load %arg1[%0] : memref<5xi32, #tpu.memory_space<smem>>
    %c1_i32 = arith.constant 1 : i32
    %2 = arith.subi %arg0, %c1_i32 : i32
    %c0_i32 = arith.constant 0 : i32
    %3 = arith.maxsi %2, %c0_i32 : i32
    %4 = arith.index_cast %3 : i32 to index
    %5 = memref.load %arg1[%4] : memref<5xi32, #tpu.memory_space<smem>>
    %c1_i32_0 = arith.constant 1 : i32
    %6 = arith.addi %arg0, %c1_i32_0 : i32
    %c4_i32 = arith.constant 4 : i32
    %7 = arith.minsi %6, %c4_i32 : i32
    %8 = arith.index_cast %7 : i32 to index
    %9 = memref.load %arg1[%8] : memref<5xi32, #tpu.memory_space<smem>>
    %c0_i32_1 = arith.constant 0 : i32
    %10 = arith.cmpi eq, %arg0, %c0_i32_1 : i32
    %11 = arith.cmpi ne, %1, %5 : i32
    %12 = arith.ori %10, %11 : i1
    %c4_i32_2 = arith.constant 4 : i32
    %13 = arith.cmpi eq, %arg0, %c4_i32_2 : i32
    %14 = arith.cmpi ne, %1, %9 : i32
    %15 = arith.ori %13, %14 : i1
    %16 = arith.extui %12 : i1 to i32
    %c0_i32_3 = arith.constant 0 : i32
    %17 = arith.cmpi ne, %16, %c0_i32_3 : i32
    scf.if %17 {
      %cst_24 = arith.constant 0.000000e+00 : f32
      %59 = vector.broadcast %cst_24 : f32 to vector<128x128xf32>
      %c0_25 = arith.constant 0 : index
      %c0_26 = arith.constant 0 : index
      %60 = vector.load %arg9[%c0_25, %c0_26] : memref<128x128xf32, #tpu.memory_space<vmem>>, vector<128x128xf32>
      tpu.vector_store %arg9[%c0_25, %c0_26], %59 {strides = array<i32>} : memref<128x128xf32, #tpu.memory_space<vmem>>, vector<128x128xf32>,
    } else {
    }
    %c0 = arith.constant 0 : index
    %c0_4 = arith.constant 0 : index
    %18 = vector.load %arg2[%c0, %c0_4] : memref<128x128xbf16, #tpu.memory_space<vmem>>, vector<128x128xbf16>
    %c0_5 = arith.constant 0 : index
    %c0_6 = arith.constant 0 : index
    %19 = vector.load %arg6[%c0_5, %c0_6] : memref<128x128xbf16, #tpu.memory_space<vmem>>, vector<128x128xbf16>
    %cst = arith.constant dense<0.000000e+00> : vector<128x128xf32>
    %20 = tpu.matmul %18, %19, %cst {dimension_numbers = #tpu.dot_dimension_numbers<[1], [0], [0], [1], [0, 0, 1, 1], [], []>} : vector<128x128xbf16>, vector<128x128xbf16>, vector<128x128xf32> -> vector<128x128xf32>
    %c0_7 = arith.constant 0 : index
    %c0_8 = arith.constant 0 : index
    %21 = vector.load %arg7[%c0_7, %c0_8] : memref<128x128xbf16, #tpu.memory_space<vmem>>, vector<128x128xbf16>
    %cst_9 = arith.constant dense<0.000000e+00> : vector<128x128xf32>
    %22 = tpu.matmul %18, %21, %cst_9 {dimension_numbers = #tpu.dot_dimension_numbers<[1], [0], [0], [1], [0, 0, 1, 1], [], []>} : vector<128x128xbf16>, vector<128x128xbf16>, vector<128x128xf32> -> vector<128x128xf32>
    %23 = vector.extract_strided_slice %22 {offsets = [0, 0], sizes = [128, 1], strides = [1, 1]} : vector<128x128xf32> to vector<128x1xf32>
    %24 = arith.negf %23 : vector<128x1xf32>
    %25 = math.exp %24 : vector<128x1xf32>
    %cst_10 = arith.constant 1.000000e+00 : f32
    %26 = vector.broadcast %cst_10 : f32 to vector<128x1xf32>
    %27 = arith.addf %26, %25 : vector<128x1xf32>
    %28 = arith.divf %26, %27 : vector<128x1xf32>
    %29 = vector.extract_strided_slice %22 {offsets = [0, 1], sizes = [128, 1], strides = [1, 1]} : vector<128x128xf32> to vector<128x1xf32>
    %30 = arith.negf %29 : vector<128x1xf32>
    %31 = math.exp %30 : vector<128x1xf32>
    %cst_11 = arith.constant 1.000000e+00 : f32
    %32 = vector.broadcast %cst_11 : f32 to vector<128x1xf32>
    %33 = arith.addf %32, %31 : vector<128x1xf32>
    %34 = arith.divf %32, %33 : vector<128x1xf32>
    %c0_12 = arith.constant 0 : index
    %c0_13 = arith.constant 0 : index
    %35 = vector.load %arg3[%c0_12, %c0_13] : memref<128x128xf32, #tpu.memory_space<vmem>>, vector<128x128xf32>
    %36 = vector.broadcast %28 : vector<128x1xf32> to vector<128x128xf32>
    %37 = arith.mulf %35, %36 : vector<128x128xf32>
    %38 = vector.broadcast %34 : vector<128x1xf32> to vector<128x128xf32>
    %39 = arith.mulf %20, %38 : vector<128x128xf32>
    %40 = arith.addf %37, %39 : vector<128x128xf32>
    %c0_14 = arith.constant 0 : index
    %c0_15 = arith.constant 0 : index
    %41 = vector.load %arg4[%c0_14, %c0_15] : memref<128x1xf32, #tpu.memory_space<vmem>>, vector<128x1xf32>
    %42 = vector.broadcast %41 : vector<128x1xf32> to vector<128x128xf32>
    %43 = arith.mulf %40, %42 : vector<128x128xf32>
    %c0_16 = arith.constant 0 : index
    %c0_17 = arith.constant 0 : index
    %44 = vector.load %arg5[%c0_16, %c0_17] : memref<1x128xi32, #tpu.memory_space<vmem>>, vector<1x128xi32>
    %c128_i32 = arith.constant 128 : i32
    %45 = arith.muli %1, %c128_i32 : i32
    %46 = vector.broadcast %45 : i32 to vector<1x128xi32>
    %47 = arith.subi %44, %46 : vector<1x128xi32>
    %48 = tpu.iota {dimensions = array<i32: 0>} : vector<128x128xi32>
    %49 = vector.broadcast %47 : vector<1x128xi32> to vector<128x128xi32>
    %50 = arith.cmpi eq, %48, %49 : vector<128x128xi32>
    %51 = arith.extui %50 : vector<128x128xi1> to vector<128x128xi32>
    %52 = arith.sitofp %51 : vector<128x128xi32> to vector<128x128xf32>
    %c0_18 = arith.constant 0 : index
    %c0_19 = arith.constant 0 : index
    %53 = vector.load %arg9[%c0_18, %c0_19] : memref<128x128xf32, #tpu.memory_space<vmem>>, vector<128x128xf32>
    %cst_20 = arith.constant dense<0.000000e+00> : vector<128x128xf32>
    %54 = tpu.matmul %52, %43, %cst_20 {dimension_numbers = #tpu.dot_dimension_numbers<[1], [0], [0], [1], [0, 0, 1, 1], [], []>} : vector<128x128xf32>, vector<128x128xf32>, vector<128x128xf32> -> vector<128x128xf32>
    %55 = arith.addf %53, %54 : vector<128x128xf32>
    %c0_21 = arith.constant 0 : index
    %c0_22 = arith.constant 0 : index
    %56 = vector.load %arg9[%c0_21, %c0_22] : memref<128x128xf32, #tpu.memory_space<vmem>>, vector<128x128xf32>
    tpu.vector_store %arg9[%c0_21, %c0_22], %55 {strides = array<i32>} : memref<128x128xf32, #tpu.memory_space<vmem>>, vector<128x128xf32>,
    %57 = arith.extui %15 : i1 to i32
    %c0_i32_23 = arith.constant 0 : i32
    %58 = arith.cmpi ne, %57, %c0_i32_23 : i32
    scf.if %58 {
      %c0_24 = arith.constant 0 : index
      %c0_25 = arith.constant 0 : index
      %59 = vector.load %arg9[%c0_24, %c0_25] : memref<128x128xf32, #tpu.memory_space<vmem>>, vector<128x128xf32>
      %c0_26 = arith.constant 0 : index
      %c0_27 = arith.constant 0 : index
      %60 = vector.load %arg8[%c0_26, %c0_27] : memref<128x1xf32, #tpu.memory_space<vmem>>, vector<128x1xf32>
      %61 = vector.broadcast %60 : vector<128x1xf32> to vector<128x128xf32>
      %62 = arith.mulf %59, %61 : vector<128x128xf32>
      %c0_28 = arith.constant 0 : index
      %c0_29 = arith.constant 0 : index
      %63 = vector.load %arg9[%c0_28, %c0_29] : memref<128x128xf32, #tpu.memory_space<vmem>>, vector<128x128xf32>
      tpu.vector_store %arg9[%c0_28, %c0_29], %62 {strides = array<i32>} : memref<128x128xf32, #tpu.memory_space<vmem>>, vector<128x128xf32>,
    } else {
    }
    return
  }
  func.func @transform_0(%arg0: i32, %arg1: memref<5xi32, #tpu.memory_space<smem>>) -> (i32, i32) {
    %c0_i32 = arith.constant 0 : i32
    %c0_i32_0 = arith.constant 0 : i32
    return %arg0, %c0_i32 : i32, i32
  }
  func.func @transform_1(%arg0: i32, %arg1: memref<5xi32, #tpu.memory_space<smem>>) -> (i32, i32) {
    %c0_i32 = arith.constant 0 : i32
    %c0_i32_0 = arith.constant 0 : i32
    return %arg0, %c0_i32 : i32, i32
  }
  func.func @transform_2(%arg0: i32, %arg1: memref<5xi32, #tpu.memory_space<smem>>) -> (i32, i32) {
    %c0_i32 = arith.constant 0 : i32
    %c0_i32_0 = arith.constant 0 : i32
    return %arg0, %c0_i32 : i32, i32
  }
  func.func @transform_3(%arg0: i32, %arg1: memref<5xi32, #tpu.memory_space<smem>>) -> (i32, i32) {
    %c0_i32 = arith.constant 0 : i32
    %c0_i32_0 = arith.constant 0 : i32
    return %c0_i32, %arg0 : i32, i32
  }
  func.func @transform_4(%arg0: i32, %arg1: memref<5xi32, #tpu.memory_space<smem>>) -> (i32, i32) {
    %c0_i32 = arith.constant 0 : i32
    %c0_i32_0 = arith.constant 0 : i32
    %c0_i32_1 = arith.constant 0 : i32
    return %c0_i32, %c0_i32_0 : i32, i32
  }
  func.func @transform_5(%arg0: i32, %arg1: memref<5xi32, #tpu.memory_space<smem>>) -> (i32, i32) {
    %c0_i32 = arith.constant 0 : i32
    %c0_i32_0 = arith.constant 0 : i32
    %c0_i32_1 = arith.constant 0 : i32
    return %c0_i32, %c0_i32_0 : i32, i32
  }
  func.func @transform_6(%arg0: i32, %arg1: memref<5xi32, #tpu.memory_space<smem>>) -> (i32, i32) {
    %0 = arith.index_cast %arg0 : i32 to index
    %1 = memref.load %arg1[%0] : memref<5xi32, #tpu.memory_space<smem>>
    %c0_i32 = arith.constant 0 : i32
    %c0_i32_0 = arith.constant 0 : i32
    return %1, %c0_i32 : i32, i32
  }
  func.func @transform_7(%arg0: i32, %arg1: memref<5xi32, #tpu.memory_space<smem>>) -> (i32, i32) {
    %0 = arith.index_cast %arg0 : i32 to index
    %1 = memref.load %arg1[%0] : memref<5xi32, #tpu.memory_space<smem>>
    %c0_i32 = arith.constant 0 : i32
    %c0_i32_0 = arith.constant 0 : i32
    return %1, %c0_i32 : i32, i32
  }
}

</mosaic_0001>

<bundles_post_ra>
// kernel: tpu_custom_call.1
= control target key start
LH: loop header
LB: loop body
LE: loop exit
PB: predicated region body
PF: predicated region fallthrough
CT: control target
= control target key end

     0   :  { %s2332_s30 = smov [#allocation3]   ;;  %s3052_s0 = inlined_call_operand.vmem [shape: s32[5], index: 0, kind: input, shape index: {}]   ;;  %s3053_s1 = inlined_call_operand.hbm [shape: bf16[640,128], index: 1, kind: input, shape index: {}]   ;;  %s3054_s2 = inlined_call_operand.vmem [shape: f32[640,128], index: 2, kind: input, shape index: {}]   ;;  %s3055_s3 = inlined_call_operand.vmem [shape: f32[640,1], index: 3, kind: input, shape index: {}]   ;;  %s3056_s4 = inlined_call_operand.vmem [shape: s32[1,640], index: 4, kind: input, shape index: {}]   ;;  %s3057_s5 = inlined_call_operand.vmem [shape: bf16[128,128], index: 5, kind: input, shape index: {}]   ;;  %s3058_s6 = inlined_call_operand.vmem [shape: bf16[128,128], index: 6, kind: input, shape index: {}]   ;;  %s3059_s7 = inlined_call_operand.vmem [shape: f32[256,1], index: 7, kind: input, shape index: {}]   ;;  %s3060_s8 = inlined_call_operand.hbm [shape: f32[256,128], index: 8, kind: output, shape index: {}]  }
   0x1   :  { %3068 = sst [smem:[#allocation16_spill]] %s3053_s1  ;;  %s14_s29 = sshll.u32 %s3052_s0, 4  ;;  %s15_s29 = int_to_ptr.vmem [resolvable:$true] %s14_s29 }
   0x2   :  { %3069 = sst [smem:[#allocation17_spill]] %s3059_s7 }
   0x3   :  { %3070 = sst [smem:[#allocation18_spill]] %s3060_s8 }
   0x4   :  { %17 = dma.vmem_to_smem %s15_s29, 16, %s2332_s30, [#allocation2] }
   0x5   :  { %2294 = dma.done.wait [#allocation2], 16 }
   0x6   :  { %2295 = vsyncadd [#allocation2], 4294967280 }
   0x7   :  { %20 = sfence }
   0x8   :  { %21 = vsyncpa [#allocation5], 0 }
   0x9   :  { %23 = vsyncpa [#allocation5 + $0x1], 0 }
   0xa   :  { %24 = vsyncpa [#allocation6], 0 }
   0xb   :  { %26 = vsyncpa [#allocation6 + $0x1], 0  ;;  %s2390_s9 = smov 0   ;;  %s2392_s10 = smov 0  }
   0xc   :  { %s2394_s11 = smov 0   ;;  %s2396_s12 = smov 0  }
   0xd   :  { %s2398_s13 = smov 0   ;;  %s2400_s0 = smov 0  }
   0xe   :  { %s2402_s14 = smov 0  }
   0xf LB: > { %3071 = sst [smem:[#allocation12_spill]] %s2306_s9  ;;  %s2424_s15 = sadd.s32 4294967295, %s2330_s14   ;;  %s2330_s14 = sphi %s2402_s14, %s3096_s14   ;;  %s2326_s0 = sphi %s2400_s0, %s3104_s0   ;;  %s2322_s13 = sphi %s2398_s13, %s3103_s13   ;;  %s2318_s12 = sphi %s2396_s12, %s3102_s12   ;;  %s2314_s11 = sphi %s2394_s11, %s3101_s11   ;;  %s2310_s10 = sphi %s2392_s10, %s3100_s10   ;;  %s2306_s9 = sphi %s2390_s9, %s3099_s9  }
  0x10   : > { %s1813_s16 = sadd.s32 4294967294, %s2330_s14   ;;  %s2428_s17 = sadd.s32 1, %s2330_s14  }
  0x11   : > { %3072 = sst [smem:[#allocation13_spill]] %s2428_s17  ;;  %s39_s18 = sadd.s32 1, %s2326_s0 }
  0x12   : > { %s36_s19 = ssub.s32 %s2330_s14, %s2428_s17  ;;  %p46_p0 = scmp.ne.s32.totalorder %s2326_s0, %s2322_s13 }
  0x13   : > { %p37_p1 = scmp.eq.s32.totalorder %s36_s19, 0  ;;  %p47_p2 = scmp.eq.s32.totalorder %s2330_s14, 0 }
  0x14   : > { %p52_p3 = scmp.ne.s32.totalorder %s2322_s13, %s2318_s12  ;;  %p53_p4 = scmp.eq.s32.totalorder %s2424_s15, 0 }
  0x15   : > { %s2439_s20 = scalar_select %p37_p1, %s2326_s0, %s39_s18  }
  0x16   : > { %p2441_p5 = por %p47_p2, %p46_p0  ;;  %p2447_p6 = por %p53_p4, %p52_p3 }
  0x17   : > { %3073 = sst [smem:[#allocation14_spill]] %s2439_s20  ;;  %s215_s24 = sadd.s32 1, %s2314_s11 }
  0x18   : > { %s210_s23 = sld [smem:[#allocation3 + %s2330_s14]]  ;;  %p225_p7 = scmp.ne.s32.totalorder %s2314_s11, %s2310_s10 }
  0x19   : > { %s211_s25 = sld [smem:[#allocation3 + %s2428_s17]]  ;;  %p3066_p8 = scmp.eq.s32.totalorder %s2424_s15, 4 }
  0x1a   : > { %p231_p9 = scmp.ne.s32.totalorder %s2310_s10, %s2306_s9  ;;  %p232_p10 = scmp.eq.s32.totalorder %s1813_s16, 4 }
  0x1b   : > { %p2461_p11 = por %p3066_p8, %p225_p7  ;;  %p2051_p12 = scmp.lt.s32.totalorder %s2330_s14, 5 }
  0x1c   : > { %p2466_p13 = por %p232_p10, %p231_p9  ;;  %s258_s28 = sand.u32 1, %s2326_s0  }
  0x1d   : > { %s1816_s29 = sshll.u32 %s258_s28, 6  ;;  %s1979_s12 = sshll.u32 %s2330_s14, 6 }
  0x1e   : > { %s3077_s27 = scalar_select %p2466_p13, 1, 0 }
  0x1f   : > { %s212_s30 = ssub.s32 %s210_s23, %s211_s25  ;;  %s3079_s1 = sld [smem:[#allocation16_spill]] }
  0x20   : > { %3078 = sst [smem:[#allocation15_spill]] %s3077_s27  ;;  %p213_p0 = scmp.eq.s32.totalorder %s212_s30, 0 }
  0x21   : > { %s262_s20 = scalar_lea.vmem [#allocation4], %s1816_s29  ;;  %p2482_p1 = pnand %p2051_p12, %p2441_p5 }
  0x22   : > { %s270_s17 = sshll.u32 %s262_s20, 4  ;;  %p1819_p2 = scmp.ge.s32.totalorder %s2330_s14, 1  ;;  %s271_s17 = int_to_ptr.vmem [resolvable:$true] %s270_s17 }
  0x23   : > { %s2476_s9 = scalar_select %p213_p0, %s2314_s11, %s215_s24  }
  0x24   : > { %s259_s23 = scalar_lea.sflag [#allocation5], %s258_s28  ;;  %p2212_p7 = pneg %p2482_p1 }
  0x25   : > { %s267_s19 = scalar_lea.hbm %s3079_s1, %s1979_s12  ;;  %s2215_s21 = scalar_lea.hbm %s3079_s1, 320 }
  0x26   : > { %s268_s8 = sshll.u32 %s267_s19, 4  ;;  %s269_s8 = int_to_ptr.hbm [resolvable:$true] %s268_s8 }
  0x27   : > { %s2208_s25 = sshra.s32 %s269_s8, 4  ;;  %s2209_s25 = int_to_ptr.hbm [resolvable:$true] %s2208_s25 }
  0x28   : > { %s2210_s30 = scalar_lea.hbm %s2209_s25, 64  ;;  %p2216_p5 = scmp.lt.s32.totalorder %s2209_s25, %s3079_s1 }
  0x29   : > { %p2211_p3 = scmp.ne.s32.totalorder %s2209_s25, %s2210_s30  ;;  %p2217_p12 = scmp.lt.s32.totalorder %s2215_s21, %s2210_s30 }
  0x2b   : > { %p2213_p9 = pnand %p2212_p7, %p2211_p3  ;;  %p2218_p0 = por %p2217_p12, %p2216_p5 }
  0x2d   : > { %p2214_p10 = pneg %p2213_p9 }
  0x2f   : > { %p2219_p8 = pnand %p2218_p0, %p2214_p10 }
  0x31   : > { %2222 = shalt.err (!%p2219_p8)
}
  0x32   : > { %s2333_s28 = smov 64   ;;  %s2334_s18 = smov 4  }
  0x33   : > { %2046 = dma.hbm_to_vmem [thread:$0]  (!%p2482_p1), %s269_s8, 1024, %s271_s17, %s259_s23, %s2333_s28, %s2333_s28, %s2334_s18  }
  0x34   : > { %p313_p3 = scmp.lt.s32.totalorder %s2330_s14, 6 }
  0x36   : > { %p314_p7 = pnand %p1819_p2, %p313_p3 }
  0x37   : > { %s319_s16 = sand.u32 (!%p314_p7), 1, %s2322_s13  }
  0x38   : > { %317 = sbr.rel (%p314_p7) target bundleno = 823 (0x337), region = 48  ;;  %s1820_s19 = sshll.u32 (!%p314_p7), %s319_s16, 6 }
  0x39   : > { %s320_s25 = scalar_lea.sflag (!%p314_p7), [#allocation5], %s319_s16  ;;  %s2501_s30 = scalar_lea.vmem (!%p314_p7), [#allocation4], %s1820_s19 }
  0x3d   : > { %2297 = dma.done.wait (%p2447_p6), %s320_s25, 1024  }
  0x3e   : > { %2299 = vsyncadd (%p2447_p6), %s320_s25, 4294966272  ;;  %s1828_s8 = sadd.s32 4294967295, %s2424_s15  ;;  %s405_s17 = sadd.s32 1, %s2424_s15 }
  0x3f   : > { %s390_s27 = sld [smem:[#allocation3 + %s2424_s15]]  ;;  %p402_p8 = scmp.gt.s32.totalorder %s1828_s8, 0 }
  0x40   : > { %s2511_s23 = sld [smem:[#allocation3 + %s2424_s15]]  ;;  %p406_p1 = scmp.lt.s32.totalorder %s405_s17, 4 }
  0x41   : > { %s3106_s8 = smov (!%p402_p8, %s1828_s8), 0  ;;  %s3067_s20 = sand.u32 1, %s2310_s10  }
  0x42   : > { %s3108_s17 = smov (!%p406_p1, %s405_s17), 4  ;;  %s404_s22 = sld [smem:[#allocation3 + %s3106_s8]] }
  0x43   : > { %s408_s24 = sld [smem:[#allocation3 + %s3108_s17]]  ;;  %s1821_s21 = sshll.u32 %s3067_s20, 7 }
  0x44   : > { %s1822_s12 = sshll.u32 %s2424_s15, 4  ;;  %p387_p10 = scmp.lt.s32.totalorder %s2424_s15, 4 }
  0x45   : > { %s1826_s29 = sshll.u32 %s390_s27, 4  ;;  %p376_p2 = scmp.lt.s32.totalorder %s1822_s12, 79 }
  0x46   : > { %p392_p6 = scmp.lt.s32.totalorder %s1826_s29, 31  ;;  %s3081_s7 = sld [smem:[#allocation17_spill]] }
  0x47   : > { %p3082_p0 = scmp.eq.s32.totalorder %s2424_s15, 4  ;;  %s3112_s12 = smov (!%p376_p2, %s1822_s12), 79 }
  0x48   : > { %s3110_s29 = smov (!%p392_p6, %s1826_s29), 31  ;;  %p410_p9 = scmp.ne.s32.totalorder %s2511_s23, %s404_s22 }
  0x49   : > { %s1827_s28 = sshll.u32 %s3110_s29, 3  ;;  %p413_p5 = scmp.ne.s32.totalorder %s2511_s23, %s408_s24 }
  0x4a   : > { %p411_p12 = por %p410_p9, %p53_p4  ;;  %s1823_s17 = sshll.u32 %s3112_s12, 3 }
  0x4b   : > { %p2529_p3 = por %p413_p5, %p3082_p0  ;;  %s2539_s24 = scalar_lea.vmem %s3054_s2, %s1823_s17  ;;  %v2335_v0 = vmov (%p411_p12), 0.0  }
  0x4c   : > { %s2523_s19 = scalar_lea.vmem %s3081_s7, %s1827_s28  ;;  %s2544_s18 = scalar_lea.vmem %s3055_s3, %s1823_s17 }
  0x4d   : > { %s2534_s8 = scalar_select %p387_p10, %s2424_s15, 4 }
  0x4e   : > { %s2550_s7 = scalar_lea.vmem [#allocation7], %s1821_s21  ;;  %417 = sbr.rel (!%p411_p12) target bundleno = 95 (0x5f), region = 56 }
  0x4f   : > { %s389_s1 = scalar_lea.vmem %s3056_s4, %s2534_s8  ;;  %418 = vst [vmem:[%s2550_s7] sm:$0xff] (%p411_p12), %v2335_v0 }
  0x50   : > { %419 = vst [vmem:[%s2550_s7 + $0x8] sm:$0xff] (%p411_p12), %v2335_v0 }
  0x51   : > { %420 = vst [vmem:[%s2550_s7 + $0x10] sm:$0xff] (%p411_p12), %v2335_v0 }
  0x52   : > { %421 = vst [vmem:[%s2550_s7 + $0x18] sm:$0xff] (%p411_p12), %v2335_v0 }
  0x53   : > { %422 = vst [vmem:[%s2550_s7 + $0x20] sm:$0xff] %v2335_v0 }
  0x54   : > { %423 = vst [vmem:[%s2550_s7 + $0x28] sm:$0xff] %v2335_v0 }
  0x55   : > { %424 = vst [vmem:[%s2550_s7 + $0x30] sm:$0xff] %v2335_v0 }
  0x56   : > { %425 = vst [vmem:[%s2550_s7 + $0x38] sm:$0xff] %v2335_v0 }
  0x57   : > { %426 = vst [vmem:[%s2550_s7 + $0x40] sm:$0xff] %v2335_v0 }
  0x58   : > { %427 = vst [vmem:[%s2550_s7 + $0x48] sm:$0xff] %v2335_v0 }
  0x59   : > { %428 = vst [vmem:[%s2550_s7 + $0x50] sm:$0xff] %v2335_v0 }
  0x5a   : > { %429 = vst [vmem:[%s2550_s7 + $0x58] sm:$0xff] %v2335_v0 }
  0x5b   : > { %430 = vst [vmem:[%s2550_s7 + $0x60] sm:$0xff] %v2335_v0 }
  0x5c   : > { %431 = vst [vmem:[%s2550_s7 + $0x68] sm:$0xff] %v2335_v0 }
  0x5d   : > { %432 = vst [vmem:[%s2550_s7 + $0x70] sm:$0xff] %v2335_v0 }
  0x5e   : > { %433 = vst [vmem:[%s2550_s7 + $0x78] sm:$0xff] %v2335_v0 }
  0x5f PF: > { %v1995_v1 = vld [vmem:[%s3057_s5 + $0x38] sm:$0xff]  ;;  %v1994_v3 = vld [vmem:[%s3057_s5 + $0x30] sm:$0xff]  ;;  %v1993_v5 = vld [vmem:[%s3057_s5 + $0x28] sm:$0xff]  ;;  %v2336_v24 = vmov 0   ;;  %v2337_v41 = vmov 1  }
  0x60   : > { %v2003_v2 = vld [vmem:[%s3058_s6 + $0x38] sm:$0xff]  ;;  %2005 = vmatpush.bf16.msra.mxu3 %v1995_v1  ;;  %v2002_v4 = vld [vmem:[%s3058_s6 + $0x30] sm:$0xff]  ;;  %562 = vmatpush.bf16.msra.mxu0 %v1995_v1  ;;  %v2001_v6 = vld [vmem:[%s3058_s6 + $0x28] sm:$0xff] }
  0x61   : > { %675 = vmatpush.bf16.msra.mxu1 %v2003_v2  ;;  %v1992_v7 = vld [vmem:[%s3057_s5 + $0x20] sm:$0xff]  ;;  %v1991_v9 = vld [vmem:[%s3057_s5 + $0x18] sm:$0xff]  ;;  %v1990_v11 = vld [vmem:[%s3057_s5 + $0x10] sm:$0xff]  ;;  %2119 = vset.pattern.permute.xlu1 %v2336_v24 }
  0x62   : > { %v2000_v8 = vld [vmem:[%s3058_s6 + $0x20] sm:$0xff]  ;;  %v1999_v10 = vld [vmem:[%s3058_s6 + $0x18] sm:$0xff]  ;;  %v1998_v12 = vld [vmem:[%s3058_s6 + $0x10] sm:$0xff]  ;;  %2120 = vset.pattern.permute.xlu2 %v2336_v24  ;;  %2121 = vset.pattern.permute.xlu0 %v2337_v41 }
  0x63   : > { %v1989_v13 = vld [vmem:[%s3057_s5 + $0x8] sm:$0xff]  ;;  %v1988_v15 = vld [vmem:[%s3057_s5] sm:$0xff]  ;;  %v1986_v17 = vld [vmem:[%s2501_s30 + $0x30] sm:$0xff] }
  0x64   : > { %2006 = vmatpush.bf16.msra.mxu3 %v1994_v3  ;;  %563 = vmatpush.bf16.msra.mxu0 %v1994_v3  ;;  %v1997_v14 = vld [vmem:[%s3058_s6 + $0x8] sm:$0xff]  ;;  %v1996_v16 = vld [vmem:[%s3058_s6] sm:$0xff]  ;;  %v1987_v19 = vld [vmem:[%s2501_s30 + $0x38] sm:$0xff] }
  0x65   : > { %676 = vmatpush.bf16.msra.mxu1 %v2002_v4  ;;  %v1980_v18 = vld [vmem:[%s2501_s30] sm:$0xff]  ;;  %v1981_v20 = vld [vmem:[%s2501_s30 + $0x8] sm:$0xff]  ;;  %v1982_v21 = vld [vmem:[%s2501_s30 + $0x10] sm:$0xff] }
  0x66   : > { %v1983_v22 = vld [vmem:[%s2501_s30 + $0x18] sm:$0xff]  ;;  %v1250_v25 = vld [vmem:[%s2544_s18 + $0x70] sm:$0xff]  ;;  %v1984_v26 = vld [vmem:[%s2501_s30 + $0x20] sm:$0xff] }
  0x67   : > { %v1251_v23 = vld [vmem:[%s2544_s18 + $0x78] sm:$0xff]  ;;  %v1249_v27 = vld [vmem:[%s2544_s18 + $0x68] sm:$0xff]  ;;  %v1248_v29 = vld [vmem:[%s2544_s18 + $0x60] sm:$0xff] }
  0x68   : > { %2007 = vmatpush.bf16.msra.mxu3 %v1993_v5  ;;  %564 = vmatpush.bf16.msra.mxu0 %v1993_v5  ;;  %v1985_v28 = vld [vmem:[%s2501_s30 + $0x28] sm:$0xff]  ;;  %v1247_v30 = vld [vmem:[%s2544_s18 + $0x58] sm:$0xff]  ;;  %v1246_v31 = vld [vmem:[%s2544_s18 + $0x50] sm:$0xff]  ;;  %s1941_s30 = sshll.u32 %s2511_s23, 7 }
  0x69   : > { %677 = vmatpush.bf16.msra.mxu1 %v2001_v6  ;;  %1329 = vperm.xlu1 %2119, %v1251_v23   ;;  %v1245_v32 = vld [vmem:[%s2544_s18 + $0x48] sm:$0xff]  ;;  %v1244_v34 = vld [vmem:[%s2544_s18 + $0x40] sm:$0xff]  ;;  %v1243_v37 = vld [vmem:[%s2544_s18 + $0x38] sm:$0xff] }
  0x6a   : > { %v1242_v40 = vld [vmem:[%s2544_s18 + $0x30] sm:$0xff] }
  0x6c   : > { %2008 = vmatpush.bf16.msra.mxu3 %v1992_v7  ;;  %565 = vmatpush.bf16.msra.mxu0 %v1992_v7 }
  0x6d   : > { %678 = vmatpush.bf16.msra.mxu1 %v2000_v8 }
  0x70   : > { %2009 = vmatpush.bf16.msra.mxu3 %v1991_v9  ;;  %566 = vmatpush.bf16.msra.mxu0 %v1991_v9 }
  0x71   : > { %679 = vmatpush.bf16.msra.mxu1 %v1999_v10  ;;  %1324 = vperm.xlu1 %2119, %v1250_v25  }
  0x74   : > { %2010 = vmatpush.bf16.msra.mxu3 %v1990_v11  ;;  %567 = vmatpush.bf16.msra.mxu0 %v1990_v11 }
  0x75   : > { %680 = vmatpush.bf16.msra.mxu1 %v1998_v12 }
  0x78   : > { %2011 = vmatpush.bf16.msra.mxu3 %v1989_v13  ;;  %568 = vmatpush.bf16.msra.mxu0 %v1989_v13 }
  0x79   : > { %681 = vmatpush.bf16.msra.mxu1 %v1997_v14  ;;  %1319 = vperm.xlu1 %2119, %v1249_v27  }
  0x7c   : > { %2012 = vmatpush.bf16.msra.mxu3 %v1988_v15  ;;  %569 = vmatpush.bf16.msra.mxu0 %v1988_v15 }
  0x7d   : > { %682 = vmatpush.bf16.msra.mxu1 %v1996_v16 }
  0x7f   : > { %600 = vmatmul.bf16.vlgmr.msra.gmra.mxu3 %v1986_v17  ;;  %570 = vmatmul.bf16.vlgmr.msra.gmra.mxu0 %v1980_v18 }
  0x80   : > { %2013 = vmatpush.bf16.msrb.mxu3 %v2003_v2  ;;  %683 = vmatmul.bf16.vlgmr.msra.gmra.mxu1 %v1980_v18 }
  0x81   : > { %1314 = vperm.xlu1 %2119, %v1248_v29  }
  0x84   : > { %2014 = vmatpush.bf16.msrb.mxu3 %v2002_v4 }
  0x88   : > { %2015 = vmatpush.bf16.msrb.mxu3 %v2001_v6 }
  0x89   : > { %1309 = vperm.xlu1 %2119, %v1247_v30  }
  0x8c   : > { %2016 = vmatpush.bf16.msrb.mxu3 %v2000_v8 }
  0x8f   : > { %605 = vmatmul.bf16.gmra.mxu3 %v1987_v19  ;;  %575 = vmatmul.bf16.gmra.mxu0 %v1981_v20 }
  0x90   : > { %2017 = vmatpush.bf16.msrb.mxu3 %v1999_v10  ;;  %688 = vmatmul.bf16.gmra.mxu1 %v1981_v20 }
  0x91   : > { %1304 = vperm.xlu1 %2119, %v1246_v31  }
  0x94   : > { %2018 = vmatpush.bf16.msrb.mxu3 %v1998_v12 }
  0x98   : > { %2019 = vmatpush.bf16.msrb.mxu3 %v1997_v14 }
  0x99   : > { %1299 = vperm.xlu1 %2119, %v1245_v32  }
  0x9c   : > { %2020 = vmatpush.bf16.msrb.mxu3 %v1996_v16 }
  0x9f   : > { %713 = vmatmul.bf16.vlgmr.msrb.gmra.mxu3 %v1986_v17  ;;  %580 = vmatmul.bf16.gmra.mxu0 %v1982_v21 }
  0xa0   : > { %693 = vmatmul.bf16.gmra.mxu1 %v1982_v21 }
  0xa1   : > { %1294 = vperm.xlu1 %2119, %v1244_v34  }
  0xa9   : > { %1289 = vperm.xlu1 %2119, %v1243_v37  }
  0xaf   : > { %718 = vmatmul.bf16.gmra.mxu3 %v1987_v19  ;;  %585 = vmatmul.bf16.gmra.mxu0 %v1983_v22 }
  0xb0   : > { %698 = vmatmul.bf16.gmra.mxu1 %v1983_v22 }
  0xb1   : > { %1284 = vperm.xlu1 %2119, %v1242_v40  }
  0xbf   : > { %590 = vmatmul.bf16.gmra.mxu0 %v1984_v26 }
  0xc0   : > { %703 = vmatmul.bf16.gmra.mxu1 %v1984_v26 }
  0xcf   : > { %595 = vmatmul.bf16.gmra.mxu0 %v1985_v28 }
  0xd0   : > { %708 = vmatmul.bf16.gmra.mxu1 %v1985_v28 }
  0xfd   : > { %v2633_v33 = vpop.f32.mrf.mxu1 }
 0x102   : > { %v2636_v35 = vpop.f32.mrf.mxu3 }
 0x105   : > { %v2638_v36 = vpop.f32.mrf.mxu1 }
 0x10a   : > { %v2641_v38 = vpop.f32.mrf.mxu3 }
 0x10d   : > { %v689_v39 = vpop.f32.mrf.mxu1 }
 0x10e   : > { %v1927_v56 = vmul.f32 -1.442695, %v689_v39 }
 0x112   : > { %v2645_v42 = vpop.f32.mrf.mxu3 }
 0x115   : > { %v691_v43 = vpop.f32.mrf.mxu1 }
 0x116   : > { %v1928_v44 = vmul.f32 -1.442695, %v691_v43 }
 0x118   : > { %2129 = vpow2.f32 %v1928_v44 }
 0x11a   : > { %v2647_v45 = vpop.f32.mrf.mxu3 }
 0x11d   : > { %v694_v46 = vpop.f32.mrf.mxu1 }
 0x11e   : > { %v2130_v47 = vpop.eup %2129  ;;  %v1929_v48 = vmul.f32 -1.442695, %v694_v46 }
 0x11f   : > { %v775_v49 = vadd.f32 1.0, %v2130_v47 }
 0x120   : > { %2131 = vpow2.f32 %v1929_v48 }
 0x121   : > { %2133 = vrcp.f32 %v775_v49  ;;  %v844_v61 = vand.u32 2147483648, %v775_v49  ;;  %v842_v1 = vand.u32 2147483647, %v775_v49  ;;  %vm838_vm1 = vweird.f32 %v775_v49 }
 0x122   : > { %v714_v50 = vpop.f32.mrf.mxu3 }
 0x123   : > { %v1937_v51 = vmul.f32 -1.442695, %v714_v50  ;;  %v845_v9 = vor.u32 1.1754944e-38, %v844_v61  ;;  %vm843_vm3 = vcmp.eq.f32.partialorder %v842_v1, 8.507059e+37 }
 0x125   : > { %v696_v52 = vpop.f32.mrf.mxu1  ;;  %2135 = vpow2.f32 %v1937_v51 }
 0x126   : > { %v2132_v53 = vpop.eup %2131  ;;  %v1930_v54 = vmul.f32 -1.442695, %v696_v52 }
 0x127   : > { %v2134_v55 = vpop.eup %2133  ;;  %v776_v57 = vadd.f32 1.0, %v2132_v53 }
 0x128   : > { %2137 = vpow2.f32 %v1930_v54  ;;  %v834_v58 = vmul.f32 %v2134_v55, %v775_v49  ;;  %vm839_vm0 = vweird.f32 %v2134_v55 }
 0x129   : > { %2139 = vrcp.f32 %v776_v57  ;;  %vm840_vm2 = vmor %vm838_vm1, %vm839_vm0  ;;  %v857_v16 = vand.u32 2147483647, %v776_v57  ;;  %v859_v17 = vand.u32 2147483648, %v776_v57  ;;  %vm853_vm5 = vweird.f32 %v776_v57 }
 0x12a   : > { %v835_v59 = vsub.f32 1.0, %v834_v58  ;;  %2141 = vpow2.f32 %v1927_v56  ;;  %v716_v60 = vpop.f32.mrf.mxu3 }
 0x12b   : > { %v2136_v62 = vpop.eup %2135  ;;  %v1938_v63 = vmul.f32 -1.442695, %v716_v60  ;;  %vm858_vm7 = vcmp.eq.f32.partialorder %v857_v16, 8.507059e+37  ;;  %v860_v32 = vor.u32 1.1754944e-38, %v859_v17 }
 0x12c   : > { %v836_v0 = vmul.f32 %v2134_v55, %v835_v59  ;;  %v2649_v2 = vadd.f32 1.0, %v2136_v62 }
 0x12d   : > { %v699_v3 = vpop.f32.mrf.mxu1  ;;  %2143 = vpow2.f32 %v1938_v63 }
 0x12e   : > { %v2138_v4 = vpop.eup %2137  ;;  %v1931_v5 = vmul.f32 -1.442695, %v699_v3  ;;  %v837_v6 = vadd.f32 %v2134_v55, %v836_v0  ;;  %2145 = vrcp.f32 %v2649_v2  ;;  %v979_v47 = vand.u32 2147483648, %v2649_v2 }
 0x12f   : > { %v2140_v7 = vpop.eup %2139  ;;  %v2652_v8 = vadd.f32 1.0, %v2138_v4  ;;  %vm973_vm9 = vweird.f32 %v2649_v2  ;;  %v977_v51 = vand.u32 2147483647, %v2649_v2 }
 0x130   : > { %2147 = vpow2.f32 %v1931_v5  ;;  %v841_v10 = vsel %vm840_vm2, %v2134_v55, %v837_v6  ;;  %v849_v11 = vmul.f32 %v2140_v7, %v776_v57  ;;  %v2142_v12 = vpop.eup %2141  ;;  %vm854_vm4 = vweird.f32 %v2140_v7 }
 0x131   : > { %2149 = vrcp.f32 %v2652_v8  ;;  %v846_v13 = vsel %vm843_vm3, %v845_v9, %v841_v10  ;;  %v2655_v22 = vadd.f32 1.0, %v2142_v12  ;;  %vm855_vm6 = vmor %vm853_vm5, %vm854_vm4  ;;  %v980_v58 = vor.u32 1.1754944e-38, %v979_v47 }
 0x132   : > { %1153 = vperm.xlu0 %2121, %v846_v13   ;;  %1061 = vperm.xlu2 %2120, %v846_v13   ;;  %v850_v14 = vsub.f32 1.0, %v849_v11  ;;  %v719_v15 = vpop.f32.mrf.mxu3  ;;  %vm978_vm11 = vcmp.eq.f32.partialorder %v977_v51, 8.507059e+37  ;;  %v872_v1 = vand.u32 2147483647, %v2652_v8  ;;  %vm868_vm13 = vweird.f32 %v2652_v8 }
 0x133   : > { %v2144_v18 = vpop.eup %2143  ;;  %v1939_v19 = vmul.f32 -1.442695, %v719_v15 }
 0x134   : > { %v851_v20 = vmul.f32 %v2140_v7, %v850_v14  ;;  %v2146_v21 = vpop.eup %2145  ;;  %v2657_v23 = vadd.f32 1.0, %v2144_v18  ;;  %vm873_vm15 = vcmp.eq.f32.partialorder %v872_v1, 8.507059e+37 }
 0x135   : > { %v701_v25 = vpop.f32.mrf.mxu1  ;;  %2151 = vpow2.f32 %v1939_v19  ;;  %v969_v29 = vmul.f32 %v2146_v21, %v2649_v2  ;;  %vm974_vm8 = vweird.f32 %v2146_v21  ;;  %v874_v2 = vand.u32 2147483648, %v2652_v8 }
 0x136   : > { %v2148_v26 = vpop.eup %2147  ;;  %v1932_v27 = vmul.f32 -1.442695, %v701_v25  ;;  %v852_v28 = vadd.f32 %v2140_v7, %v851_v20  ;;  %2153 = vrcp.f32 %v2657_v23  ;;  %vm975_vm10 = vmor %vm973_vm9, %vm974_vm8 }
 0x137   : > { %v2660_v30 = vpop.eup %2149  ;;  %v2663_v31 = vadd.f32 1.0, %v2148_v26  ;;  %v970_v37 = vsub.f32 1.0, %v969_v29 }
 0x138   : > { %2155 = vpow2.f32 %v1932_v27  ;;  %v856_v34 = vsel %vm855_vm6, %v2140_v7, %v852_v28  ;;  %v864_v39 = vmul.f32 %v2660_v30, %v2652_v8  ;;  %vm869_vm12 = vweird.f32 %v2660_v30 }
 0x139   : > { %2157 = vrcp.f32 %v2663_v31  ;;  %v861_v40 = vsel %vm858_vm7, %v860_v32, %v856_v34  ;;  %v971_v43 = vmul.f32 %v2146_v21, %v970_v37  ;;  %vm2693_vm14 = vmor %vm868_vm13, %vm869_vm12  ;;  %v875_v8 = vor.u32 1.1754944e-38, %v874_v2 }
 0x13a   : > { %2159 = vrcp.f32 %v2655_v22  ;;  %1157 = vperm.xlu0 %2121, %v861_v40   ;;  %1066 = vperm.xlu2 %2120, %v861_v40   ;;  %v865_v44 = vsub.f32 1.0, %v864_v39  ;;  %v721_v46 = vpop.f32.mrf.mxu3  ;;  %vm883_vm3 = vweird.f32 %v2663_v31  ;;  %vm988_vm6 = vweird.f32 %v2657_v23 }
 0x13b   : > { %v2152_v48 = vpop.eup %2151  ;;  %v1940_v49 = vmul.f32 -1.442695, %v721_v46  ;;  %v972_v50 = vadd.f32 %v2146_v21, %v971_v43  ;;  %v889_v32 = vand.u32 2147483648, %v2663_v31  ;;  %v992_v39 = vand.u32 2147483647, %v2657_v23 }
 0x13c   : > { %v2672_v52 = vpop.eup %2153  ;;  %v786_v53 = vadd.f32 1.0, %v2152_v48  ;;  %v866_v56 = vmul.f32 %v2660_v30, %v865_v44  ;;  %v887_v40 = vand.u32 2147483647, %v2663_v31  ;;  %vm823_vm13 = vweird.f32 %v2655_v22 }
 0x13d   : > { %v976_v55 = vsel %vm975_vm10, %v2146_v21, %v972_v50  ;;  %v984_v62 = vmul.f32 %v2672_v52, %v2657_v23  ;;  %v704_v9 = vpop.f32.mrf.mxu1  ;;  %vm989_vm2 = vweird.f32 %v2672_v52  ;;  %v890_v51 = vor.u32 1.1754944e-38, %v889_v32 }
 0x13e   : > { %v2156_v54 = vpop.eup %2155  ;;  %2161 = vrcp.f32 %v786_v53  ;;  %v981_v61 = vsel %vm978_vm11, %v980_v58, %v976_v55  ;;  %v867_v63 = vadd.f32 %v2660_v30, %v866_v56  ;;  %v1009_v15 = vand.u32 2147483648, %v786_v53  ;;  %vm2720_vm8 = vmor %vm988_vm6, %vm989_vm2 }
 0x13f   : > { %v2675_v57 = vpop.eup %2157  ;;  %2163 = vpow2.f32 %v1940_v49  ;;  %v2679_v60 = vadd.f32 1.0, %v2156_v54  ;;  %v985_v3 = vsub.f32 1.0, %v984_v62  ;;  %vm1003_vm0 = vweird.f32 %v786_v53 }
 0x140   : > { %v2677_v59 = vpop.eup %2159  ;;  %v879_v0 = vmul.f32 %v2675_v57, %v2663_v31  ;;  %v871_v11 = vsel %vm2693_vm14, %v2660_v30, %v867_v63  ;;  %v1007_v18 = vand.u32 2147483647, %v786_v53  ;;  %vm884_vm4 = vweird.f32 %v2675_v57 }
 0x141   : > { %v819_v4 = vmul.f32 %v2677_v59, %v2655_v22  ;;  %2165 = vrcp.f32 %v2679_v60  ;;  %v986_v13 = vmul.f32 %v2672_v52, %v985_v3  ;;  %v876_v20 = vsel %vm873_vm15, %v875_v8, %v871_v11  ;;  %vm885_vm9 = vmor %vm883_vm3, %vm884_vm4  ;;  %v1241_v11 = vld [vmem:[%s2544_s18 + $0x28] sm:$0xff] }
 0x142   : > { %1189 = vperm.xlu0 %2121, %v981_v61   ;;  %1106 = vperm.xlu2 %2120, %v981_v61   ;;  %v880_v5 = vsub.f32 1.0, %v879_v0  ;;  %v1010_v29 = vor.u32 1.1754944e-38, %v1009_v15  ;;  %v994_v30 = vand.u32 2147483648, %v2657_v23  ;;  %vm1008_vm7 = vcmp.eq.f32.partialorder %v1007_v18, 8.507059e+37 }
 0x143   : > { %v820_v16 = vsub.f32 1.0, %v819_v4  ;;  %v987_v25 = vadd.f32 %v2672_v52, %v986_v13  ;;  %v1933_v43 = vmul.f32 -1.442695, %v704_v9  ;;  %vm993_vm10 = vcmp.eq.f32.partialorder %v992_v39, 8.507059e+37  ;;  %v1239_v39 = vld [vmem:[%s2544_s18 + $0x18] sm:$0xff] }
 0x144   : > { %v2162_v6 = vpop.eup %2161  ;;  %v881_v14 = vmul.f32 %v2675_v57, %v880_v5  ;;  %v995_v50 = vor.u32 1.1754944e-38, %v994_v30  ;;  %vm888_vm11 = vcmp.eq.f32.partialorder %v887_v40, 8.507059e+37  ;;  %vm824_vm12 = vweird.f32 %v2677_v59 }
 0x145   : > { %v2164_v10 = vpop.eup %2163  ;;  %v999_v12 = vmul.f32 %v2162_v6, %v786_v53  ;;  %vm1004_vm1 = vweird.f32 %v2162_v6  ;;  %v821_v44 = vmul.f32 %v2677_v59, %v820_v16  ;;  %v991_v47 = vsel %vm2720_vm8, %v2672_v52, %v987_v25  ;;  %v706_v53 = vpop.f32.mrf.mxu1  ;;  %vm825_vm14 = vmor %vm823_vm13, %vm824_vm12 }
 0x146   : > { %v2702_v19 = vadd.f32 1.0, %v2164_v10  ;;  %v882_v26 = vadd.f32 %v2675_v57, %v881_v14  ;;  %vm2711_vm5 = vmor %vm1003_vm0, %vm1004_vm1  ;;  %v996_v31 = vsel %vm993_vm10, %v995_v50, %v991_v47  ;;  %v827_v58 = vand.u32 2147483647, %v2655_v22 }
 0x147   : > { %v1000_v17 = vsub.f32 1.0, %v999_v12  ;;  %v2709_v27 = vpop.eup %2165  ;;  %v822_v55 = vadd.f32 %v2677_v59, %v821_v44  ;;  %v1934_v61 = vmul.f32 -1.442695, %v706_v53  ;;  %v904_v5 = vand.u32 2147483648, %v2679_v60  ;;  %v2793_v53 = vpop.permute.xlu1 %1329 }
 0x148   : > { %2167 = vrcp.f32 %v2702_v19  ;;  %v886_v48 = vsel %vm885_vm9, %v2675_v57, %v882_v26  ;;  %v894_v23 = vmul.f32 %v2709_v27, %v2679_v60  ;;  %v829_v57 = vand.u32 2147483648, %v2655_v22  ;;  %v1240_v26 = vld [vmem:[%s2544_s18 + $0x20] sm:$0xff] }
 0x149   : > { %v1001_v21 = vmul.f32 %v2162_v6, %v1000_v17  ;;  %v891_v54 = vsel %vm888_vm11, %v890_v51, %v886_v48  ;;  %2169 = vpow2.f32 %v1933_v43  ;;  %v826_v62 = vsel %vm825_vm14, %v2677_v59, %v822_v55 }
 0x14a   : > { %1161 = vperm.xlu0 %2121, %v876_v20   ;;  %1071 = vperm.xlu2 %2120, %v876_v20   ;;  %v895_v52 = vsub.f32 1.0, %v894_v23  ;;  %v830_v0 = vor.u32 1.1754944e-38, %v829_v57  ;;  %vm828_vm15 = vcmp.eq.f32.partialorder %v827_v58, 8.507059e+37  ;;  %2171 = vpow2.f32 %v1934_v61 }
 0x14b   : > { %v1002_v34 = vadd.f32 %v2162_v6, %v1001_v21  ;;  %vm899_vm0 = vweird.f32 %v2709_v27  ;;  %vm898_vm1 = vweird.f32 %v2679_v60  ;;  %v902_v7 = vand.u32 2147483647, %v2679_v60 }
 0x14c   : > { %v896_v63 = vmul.f32 %v2709_v27, %v895_v52  ;;  %v831_v3 = vsel %vm828_vm15, %v830_v0, %v826_v62  ;;  %vm900_vm2 = vmor %vm898_vm1, %vm899_vm0  ;;  %v905_v12 = vor.u32 1.1754944e-38, %v904_v5  ;;  %v1024_v60 = vand.u32 2147483648, %v2702_v19  ;;  %v2810_v5 = vpop.f32.mrf.mxu0 }
 0x14d   : > { %v1006_v46 = vsel %vm2711_vm5, %v2162_v6, %v1002_v34  ;;  %v709_v4 = vpop.f32.mrf.mxu1  ;;  %vm903_vm3 = vcmp.eq.f32.partialorder %v902_v7, 8.507059e+37  ;;  %vm1018_vm4 = vweird.f32 %v2702_v19  ;;  %v1022_v20 = vand.u32 2147483647, %v2702_v19 }
 0x14e   : > { %v1011_v49 = vsel %vm1008_vm7, %v1010_v29, %v1006_v46  ;;  %v2740_v56 = vpop.eup %2167  ;;  %v897_v22 = vadd.f32 %v2709_v27, %v896_v63  ;;  %v1935_v9 = vmul.f32 -1.442695, %v709_v4  ;;  %v1025_v25 = vor.u32 1.1754944e-38, %v1024_v60 }
 0x14f   : > { %1116 = vperm.xlu1 %2119, %v1011_v49   ;;  %v1014_v1 = vmul.f32 %v2740_v56, %v2702_v19  ;;  %v2170_v2 = vpop.eup %2169  ;;  %vm1019_vm5 = vweird.f32 %v2740_v56  ;;  %vm1023_vm7 = vcmp.eq.f32.partialorder %v1022_v20, 8.507059e+37  ;;  %v1926_v37 = vmul.f32 -1.442695, %v2638_v36 }
 0x150   : > { %v2753_v59 = vadd.f32 1.0, %v2170_v2  ;;  %v901_v10 = vsel %vm900_vm2, %v2709_v27, %v897_v22  ;;  %v2172_v14 = vpop.eup %2171  ;;  %vm1020_vm6 = vmor %vm1018_vm4, %vm1019_vm5  ;;  %v1925_v51 = vmul.f32 -1.442695, %v2633_v33 }
 0x151   : > { %v1015_v6 = vsub.f32 1.0, %v1014_v1  ;;  %v906_v8 = vsel %vm903_vm3, %v905_v12, %v901_v10  ;;  %v2764_v15 = vadd.f32 1.0, %v2172_v14 }
 0x152   : > { %1111 = vperm.xlu2 %2120, %v996_v31   ;;  %1165 = vperm.xlu0 %2121, %v891_v54   ;;  %2173 = vrcp.f32 %v2753_v59  ;;  %vm913_vm8 = vweird.f32 %v2753_v59  ;;  %v919_v47 = vand.u32 2147483648, %v2753_v59  ;;  %v917_v48 = vand.u32 2147483647, %v2753_v59 }
 0x153   : > { %v1016_v13 = vmul.f32 %v2740_v56, %v1015_v6  ;;  %2175 = vpow2.f32 %v1935_v9  ;;  %vm928_vm12 = vweird.f32 %v2764_v15  ;;  %v934_v58 = vand.u32 2147483648, %v2764_v15 }
 0x154   : > { %2177 = vrcp.f32 %v2764_v15  ;;  %vm918_vm11 = vcmp.eq.f32.partialorder %v917_v48, 8.507059e+37  ;;  %v932_v62 = vand.u32 2147483647, %v2764_v15 }
 0x155   : > { %v711_v16 = vpop.f32.mrf.mxu1  ;;  %v1017_v17 = vadd.f32 %v2740_v56, %v1016_v13  ;;  %v935_v1 = vor.u32 1.1754944e-38, %v934_v58 }
 0x156   : > { %v1936_v21 = vmul.f32 -1.442695, %v711_v16  ;;  %vm933_vm15 = vcmp.eq.f32.partialorder %v932_v62, 8.507059e+37 }
 0x157   : > { %2124 = vset.pattern.permute.xlu1 %v2337_v41  ;;  %v1021_v27 = vsel %vm1020_vm6, %v2740_v56, %v1017_v17 }
 0x158   : > { %1197 = vperm.xlu1 %2124, %v1011_v49   ;;  %v2174_v18 = vpop.eup %2173  ;;  %2179 = vpow2.f32 %v1936_v21  ;;  %v1026_v30 = vsel %vm1023_vm7, %v1025_v25, %v1021_v27 }
 0x159   : > { %v2176_v28 = vpop.eup %2175  ;;  %v909_v29 = vmul.f32 %v2174_v18, %v2753_v59  ;;  %vm914_vm9 = vweird.f32 %v2174_v18 }
 0x15a   : > { %2122 = vset.pattern.permute.xlu2 %v2337_v41  ;;  %1149 = vperm.xlu0 %2121, %v831_v3   ;;  %v2776_v32 = vadd.f32 1.0, %v2176_v28  ;;  %v2178_v34 = vpop.eup %2177  ;;  %vm2788_vm10 = vmor %vm913_vm8, %vm914_vm9 }
 0x15b   : > { %1193 = vperm.xlu2 %2122, %v996_v31   ;;  %v910_v19 = vsub.f32 1.0, %v909_v29  ;;  %v924_v44 = vmul.f32 %v2178_v34, %v2764_v15  ;;  %v920_v31 = vor.u32 1.1754944e-38, %v919_v47  ;;  %vm929_vm13 = vweird.f32 %v2178_v34 }
 0x15c   : > { %2181 = vrcp.f32 %v2776_v32  ;;  %vm930_vm14 = vmor %vm928_vm12, %vm929_vm13  ;;  %vm943_vm0 = vweird.f32 %v2776_v32  ;;  %v949_v9 = vand.u32 2147483648, %v2776_v32 }
 0x15d   : > { %v911_v43 = vmul.f32 %v2174_v18, %v910_v19  ;;  %2183 = vpow2.f32 %v1926_v37  ;;  %v925_v23 = vsub.f32 1.0, %v924_v44 }
 0x15e   : > { %v2180_v40 = vpop.eup %2179  ;;  %v950_v14 = vor.u32 1.1754944e-38, %v949_v9 }
 0x15f   : > { %v2783_v46 = vadd.f32 1.0, %v2180_v40  ;;  %v912_v36 = vadd.f32 %v2174_v18, %v911_v43  ;;  %v926_v52 = vmul.f32 %v2178_v34, %v925_v23 }
 0x160   : > { %2125 = vset.pattern.permute.xlu1 %v2336_v24 }
 0x161   : > { %1279 = vperm.xlu1 %2125, %v1241_v11   ;;  %2185 = vrcp.f32 %v2783_v46  ;;  %v916_v55 = vsel %vm2788_vm10, %v2174_v18, %v912_v36  ;;  %v927_v61 = vadd.f32 %v2178_v34, %v926_v52  ;;  %v947_v11 = vand.u32 2147483647, %v2776_v32 }
 0x162   : > { %1169 = vperm.xlu0 %2121, %v906_v8   ;;  %v2182_v49 = vpop.eup %2181  ;;  %2187 = vpow2.f32 %v1925_v51  ;;  %v921_v57 = vsel %vm918_vm11, %v920_v31, %v916_v55  ;;  %vm958_vm4 = vweird.f32 %v2783_v46  ;;  %v964_v18 = vand.u32 2147483648, %v2783_v46 }
 0x163   : > { %2123 = vset.pattern.permute.xlu2 %v2336_v24  ;;  %v939_v56 = vmul.f32 %v2182_v49, %v2776_v32  ;;  %v931_v4 = vsel %vm930_vm14, %v2178_v34, %v927_v61  ;;  %vm944_vm1 = vweird.f32 %v2182_v49  ;;  %vm948_vm3 = vcmp.eq.f32.partialorder %v947_v11, 8.507059e+37 }
 0x164   : > { %1076 = vperm.xlu2 %2123, %v891_v54   ;;  %v2184_v54 = vpop.eup %2183  ;;  %v936_v7 = vsel %vm933_vm15, %v935_v1, %v931_v4  ;;  %vm945_vm2 = vmor %vm943_vm0, %vm944_vm1  ;;  %v962_v25 = vand.u32 2147483647, %v2783_v46  ;;  %v965_v29 = vor.u32 1.1754944e-38, %v964_v18  ;;  %v1032_v4 = vld [vmem:[%s2539_s24 + $0x20] sm:$0xff] }
 0x165   : > { %v2801_v33 = vadd.f32 1.0, %v2184_v54  ;;  %v940_v63 = vsub.f32 1.0, %v939_v56 }
 0x166   : > { %vm963_vm7 = vcmp.eq.f32.partialorder %v962_v25, 8.507059e+37 }
 0x167   : > { %v2186_v0 = vpop.eup %2185  ;;  %2189 = vrcp.f32 %v2801_v33  ;;  %v941_v22 = vmul.f32 %v2182_v49, %v940_v63  ;;  %v814_v44 = vand.u32 2147483648, %v2801_v33  ;;  %vm808_vm9 = vweird.f32 %v2801_v33 }
 0x168   : > { %v2188_v2 = vpop.eup %2187  ;;  %v954_v59 = vmul.f32 %v2186_v0, %v2783_v46  ;;  %vm959_vm5 = vweird.f32 %v2186_v0  ;;  %v812_v46 = vand.u32 2147483647, %v2801_v33 }
 0x169   : > { %1274 = vperm.xlu1 %2125, %v1240_v26   ;;  %v2812_v6 = vadd.f32 1.0, %v2188_v2  ;;  %v942_v10 = vadd.f32 %v2182_v49, %v941_v22  ;;  %v2823_v26 = vpop.f32.mrf.mxu0  ;;  %vm960_vm6 = vmor %vm958_vm4, %vm959_vm5  ;;  %v815_v23 = vor.u32 1.1754944e-38, %v814_v44  ;;  %v1237_v2 = vld [vmem:[%s2544_s18 + $0x8] sm:$0xff] }
 0x16a   : > { %2126 = vset.pattern.permute.xlu0 %v2336_v24  ;;  %v955_v12 = vsub.f32 1.0, %v954_v59  ;;  %vm813_vm11 = vcmp.eq.f32.partialorder %v812_v46, 8.507059e+37  ;;  %v1236_v59 = vld [vmem:[%s2544_s18] sm:$0xff] }
 0x16b   : > { %1121 = vperm.xlu0 %2126, %v1026_v30   ;;  %2191 = vrcp.f32 %v2812_v6  ;;  %vm793_vm13 = vweird.f32 %v2812_v6  ;;  %v797_v54 = vand.u32 2147483647, %v2812_v6 }
 0x16c   : > { %1056 = vperm.xlu2 %2123, %v831_v3   ;;  %v2806_v3 = vpop.permute.xlu1 %1324  ;;  %v956_v60 = vmul.f32 %v2186_v0, %v955_v12 }
 0x16d   : > { %v2190_v13 = vpop.eup %2189  ;;  %vm798_vm15 = vcmp.eq.f32.partialorder %v797_v54, 8.507059e+37 }
 0x16e   : > { %v804_v15 = vmul.f32 %v2190_v13, %v2801_v33  ;;  %v957_v21 = vadd.f32 %v2186_v0, %v956_v60  ;;  %vm809_vm8 = vweird.f32 %v2190_v13  ;;  %v1031_v33 = vld [vmem:[%s2539_s24 + $0x18] sm:$0xff] }
 0x16f   : > { %vm810_vm10 = vmor %vm808_vm9, %vm809_vm8 }
 0x170   : > { %v805_v27 = vsub.f32 1.0, %v804_v15 }
 0x171   : > { %1269 = vperm.xlu1 %2125, %v1239_v39   ;;  %v2192_v28 = vpop.eup %2191  ;;  %v2831_v47 = vpop.f32.mrf.mxu0 }
 0x172   : > { %v806_v32 = vmul.f32 %v2190_v13, %v805_v27  ;;  %v789_v19 = vmul.f32 %v2192_v28, %v2812_v6  ;;  %vm794_vm12 = vweird.f32 %v2192_v28 }
 0x173   : > { %2127 = vset.pattern.permute.xlu0 %v2337_v41  ;;  %v1238_v41 = vld [vmem:[%s2544_s18 + $0x10] sm:$0xff]  ;;  %vm795_vm14 = vmor %vm793_vm13, %vm794_vm12 }
 0x174   : > { %1201 = vperm.xlu0 %2127, %v1026_v30   ;;  %1081 = vperm.xlu2 %2123, %v906_v8   ;;  %v946_v8 = vsel %vm945_vm2, %v2182_v49, %v942_v10  ;;  %v2818_v16 = vpop.permute.xlu1 %1319  ;;  %v961_v30 = vsel %vm960_vm6, %v2186_v0, %v957_v21  ;;  %v807_v40 = vadd.f32 %v2190_v13, %v806_v32  ;;  %v790_v43 = vsub.f32 1.0, %v789_v19 }
 0x175   : > { %v951_v17 = vsel %vm948_vm3, %v950_v14, %v946_v8  ;;  %v966_v34 = vsel %vm963_vm7, %v965_v29, %v961_v30  ;;  %v1033_v14 = vld [vmem:[%s2539_s24 + $0x28] sm:$0xff] }
 0x176   : > { %v811_v36 = vsel %vm810_vm10, %v2190_v13, %v807_v40  ;;  %v791_v48 = vmul.f32 %v2192_v28, %v790_v43 }
 0x177   : > { %v816_v49 = vsel %vm813_vm11, %v815_v23, %v811_v36  ;;  %v1042_v36 = vld [vmem:[%s2539_s24 + $0x70] sm:$0xff] }
 0x178   : > { %v792_v51 = vadd.f32 %v2192_v28, %v791_v48  ;;  %v1043_v48 = vld [vmem:[%s2539_s24 + $0x78] sm:$0xff] }
 0x179   : > { %1264 = vperm.xlu1 %2125, %v1238_v41   ;;  %v799_v41 = vand.u32 2147483648, %v2812_v6  ;;  %v578_v52 = vpop.f32.mrf.mxu0 }
 0x17a   : > { %v796_v55 = vsel %vm795_vm14, %v2192_v28, %v792_v51 }
 0x17b   : > { %v800_v56 = vor.u32 1.1754944e-38, %v799_v41 }
 0x17c   : > { %1173 = vperm.xlu0 %2127, %v921_v57   ;;  %1086 = vperm.xlu2 %2123, %v921_v57   ;;  %v2826_v37 = vpop.permute.xlu1 %1314 }
 0x17d   : > { %v801_v57 = vsel %vm798_vm15, %v800_v56, %v796_v55  ;;  %v1040_v56 = vld [vmem:[%s2539_s24 + $0x60] sm:$0xff] }
 0x181   : > { %v581_v22 = vpop.f32.mrf.mxu0 }
 0x184   : > { %1177 = vperm.xlu0 %2127, %v936_v7   ;;  %1091 = vperm.xlu2 %2123, %v936_v7   ;;  %v2836_v31 = vpop.permute.xlu1 %1309 }
 0x189   : > { %v583_v60 = vpop.f32.mrf.mxu0 }
 0x18c   : > { %v1062_v20 = vpop.permute.xlu2 %1061  ;;  %1181 = vperm.xlu0 %2127, %v951_v17   ;;  %1096 = vperm.xlu2 %2123, %v951_v17   ;;  %v2843_v1 = vpop.permute.xlu1 %1304 }
 0x18d   : > { %v1127_v61 = vmul.f32 %v1062_v20, %v1031_v33 }
 0x191   : > { %v2872_v19 = vpop.f32.mrf.mxu0 }
 0x194   : > { %v1067_v39 = vpop.permute.xlu2 %1066  ;;  %1185 = vperm.xlu0 %2127, %v966_v34   ;;  %1101 = vperm.xlu2 %2123, %v966_v34   ;;  %v2851_v12 = vpop.permute.xlu1 %1299 }
 0x195   : > { %v1128_v7 = vmul.f32 %v1067_v39, %v1032_v4 }
 0x199   : > { %v588_v43 = vpop.f32.mrf.mxu0 }
 0x19c   : > { %v2833_v50 = vpop.permute.xlu2 %1106  ;;  %1145 = vperm.xlu0 %2127, %v816_v49   ;;  %1051 = vperm.xlu2 %2123, %v816_v49   ;;  %v2854_v15 = vpop.permute.xlu1 %1294  ;;  %v1041_v49 = vld [vmem:[%s2539_s24 + $0x68] sm:$0xff] }
 0x1a1   : > { %v591_v33 = vpop.f32.mrf.mxu0 }
 0x1a4   : > { %v1154_v58 = vpop.permute.xlu0 %1153  ;;  %1141 = vperm.xlu0 %2127, %v801_v57   ;;  %1046 = vperm.xlu2 %2123, %v801_v57   ;;  %v1072_v63 = vpop.permute.xlu2 %1071 }
 0x1a5   : > { %v1207_v62 = vmul.f32 %v1154_v58, %v578_v52  ;;  %v1129_v18 = vmul.f32 %v1072_v63, %v1033_v14  ;;  %v2862_v27 = vpop.permute.xlu1 %1289  ;;  %v1136_v63 = vmul.f32 %v2833_v50, %v1040_v56  ;;  %v1039_v14 = vld [vmem:[%s2539_s24 + $0x58] sm:$0xff] }
 0x1a7   : > { %v2841_v0 = vadd.f32 %v1207_v62, %v1127_v61 }
 0x1a9   : > { %v593_v50 = vpop.f32.mrf.mxu0 }
 0x1ac   : > { %v1158_v6 = vpop.permute.xlu0 %1157  ;;  %2128 = vset.pattern.permute.xlu0 %v2336_v24  ;;  %1259 = vperm.xlu2 %2123, %v1237_v2   ;;  %v1112_v11 = vpop.permute.xlu2 %1111 }
 0x1ad   : > { %v1208_v9 = vmul.f32 %v1158_v6, %v581_v22  ;;  %1254 = vperm.xlu0 %2128, %v1236_v59   ;;  %v2868_v30 = vpop.permute.xlu1 %1284  ;;  %v1137_v57 = vmul.f32 %v1112_v11, %v1041_v49 }
 0x1af   : > { %v2849_v10 = vadd.f32 %v1208_v9, %v1128_v7 }
 0x1b4   : > { %v1190_v13 = vpop.permute.xlu0 %1189 }
 0x1b5   : > { %v1194_v8 = vpop.permute.xlu2 %1193  ;;  %v1216_v58 = vmul.f32 %v1190_v13, %v2636_v35  ;;  %v1038_v13 = vld [vmem:[%s2539_s24 + $0x50] sm:$0xff] }
 0x1b6   : > { %v1217_v41 = vmul.f32 %v1194_v8, %v2641_v38 }
 0x1b7   : > { %v1232_v22 = vadd.f32 %v1216_v58, %v1136_v63 }
 0x1b8   : > { %v1233_v2 = vadd.f32 %v1217_v41, %v1137_v57  ;;  %v1034_v57 = vld [vmem:[%s2539_s24 + $0x30] sm:$0xff] }
 0x1ba   : > { %v1345_v35 = vmul.f32 %v2818_v16, %v1233_v2 }
 0x1bc   : > { %v1162_v17 = vpop.permute.xlu0 %1161 }
 0x1bd   : > { %v1209_v20 = vmul.f32 %v1162_v17, %v583_v60  ;;  %v1037_v60 = vld [vmem:[%s2539_s24 + $0x48] sm:$0xff] }
 0x1be   : > { %v2858_v21 = vpop.permute.xlu2 %1076 }
 0x1bf   : > { %v2856_v24 = vadd.f32 %v1209_v20, %v1129_v18 }
 0x1c1   : > { %v1117_v34 = vpop.permute.xlu1 %1116 }
 0x1c2   : > { %v1138_v54 = vmul.f32 %v1117_v34, %v1042_v36 }
 0x1c4   : > { %v2860_v25 = vpop.permute.xlu0 %1165 }
 0x1c5   : > { %v1210_v58 = vmul.f32 %v2860_v25, %v2872_v19 }
 0x1c6   : > { %v2866_v29 = vpop.permute.xlu2 %1056 }
 0x1ca   : > { %v1198_v44 = vpop.permute.xlu1 %1197 }
 0x1cb   : > { %v1218_v23 = vmul.f32 %v1198_v44, %v2645_v42  ;;  %v1036_v44 = vld [vmem:[%s2539_s24 + $0x40] sm:$0xff] }
 0x1cc   : > { %v2864_v28 = vpop.permute.xlu0 %1149 }
 0x1cd   : > { %v1234_v61 = vadd.f32 %v1218_v23, %v1138_v54 }
 0x1ce   : > { %v2874_v39 = vpop.permute.xlu2 %1081 }
 0x1cf   : > { %v1346_v38 = vmul.f32 %v2806_v3, %v1234_v61  ;;  %v596_v3 = vpop.f32.mrf.mxu0 }
 0x1d3   : > { %v1280_v7 = vpop.permute.xlu1 %1279 }
 0x1d4   : > { %v2870_v32 = vpop.permute.xlu0 %1169 }
 0x1d5   : > { %v1211_v54 = vmul.f32 %v2870_v32, %v588_v43  ;;  %v1130_v32 = vmul.f32 %v2858_v21, %v1034_v57  ;;  %v1030_v21 = vld [vmem:[%s2539_s24 + $0x10] sm:$0xff] }
 0x1d6   : > { %v1087_v46 = vpop.permute.xlu2 %1086 }
 0x1d7   : > { %v598_v17 = vpop.f32.mrf.mxu0  ;;  %v1226_v25 = vadd.f32 %v1210_v58, %v1130_v32  ;;  %v1420_v58 = vld [vmem:[%s2550_s7 + $0x10] sm:$0xff] }
 0x1d9   : > { %v1338_v2 = vmul.f32 %v2868_v30, %v1226_v25  ;;  %v1430_v25 = vld [vmem:[%s2550_s7 + $0x60] sm:$0xff] }
 0x1db   : > { %v1275_v8 = vpop.permute.xlu1 %1274 }
 0x1dc   : > { %v1336_v30 = vmul.f32 %v1275_v8, %v2849_v10 }
 0x1dd   : > { %v1122_v40 = vpop.permute.xlu0 %1121 }
 0x1de   : > { %v1139_v55 = vmul.f32 %v1122_v40, %v1043_v48  ;;  %v1092_v4 = vpop.permute.xlu2 %1091 }
 0x1df   : > { %v1133_v36 = vmul.f32 %v1092_v4, %v1037_v60  ;;  %v1348_v4 = vld [vmem:[%s389_s1] sm:$0x1] }
 0x1e6   : > { %v1202_v51 = vpop.permute.xlu0 %1201 }
 0x1e7   : > { %v1219_v52 = vmul.f32 %v1202_v51, %v2647_v45  ;;  %v1344_v45 = vmul.f32 %v2826_v37, %v1232_v22  ;;  %v1035_v51 = vld [vmem:[%s2539_s24 + $0x38] sm:$0xff]  ;;  %v1206_v22 = vmul.f32 %v2864_v28, %v2831_v47 }
 0x1e8   : > { %v1131_v61 = vmul.f32 %v2874_v39, %v1035_v51 }
 0x1e9   : > { %v1235_v62 = vadd.f32 %v1219_v52, %v1139_v55  ;;  %v1132_v55 = vmul.f32 %v1087_v46, %v1036_v44  ;;  %v1270_v46 = vpop.permute.xlu1 %1269 }
 0x1ea   : > { %v1227_v43 = vadd.f32 %v1211_v54, %v1131_v61  ;;  %v1335_v47 = vmul.f32 %v1270_v46, %v2841_v0 }
 0x1eb   : > { %v1347_v42 = vmul.f32 %v2793_v53, %v1235_v62  ;;  %v1097_v53 = vpop.permute.xlu2 %1096 }
 0x1ec   : > { %v1134_v37 = vmul.f32 %v1097_v53, %v1038_v13  ;;  %v1352_v53 = vlaneseq }
 0x1ed   : > { %1434 = vmatpush.msra.mxu2 %v1347_v42  ;;  %2021 = vmatpush.msra.mxu3 %v1347_v42 }
 0x1ee   : > { %v1174_v59 = vpop.permute.xlu0 %1173  ;;  %v1353_v10 = vshrl.u32 %v1352_v53, 7  ;;  %v1433_v53 = vld [vmem:[%s2550_s7 + $0x78] sm:$0xff] }
 0x1ef   : > { %1435 = vmatpush.msra.mxu2 %v1346_v38  ;;  %2022 = vmatpush.msra.mxu3 %v1346_v38  ;;  %v1212_v48 = vmul.f32 %v1174_v59, %v591_v33  ;;  %v1126_v59 = vmul.f32 %v2866_v29, %v1030_v21 }
 0x1f0   : > { %v1354_v0 = vadd.s32 8, %v1353_v10  ;;  %v1356_v60 = vadd.s32 24, %v1353_v10  ;;  %v1360_v44 = vadd.s32 56, %v1353_v10  ;;  %v1364_v51 = vadd.s32 88, %v1353_v10 }
 0x1f1   : > { %1436 = vmatpush.msra.mxu2 %v1345_v35  ;;  %2023 = vmatpush.msra.mxu3 %v1345_v35  ;;  %v1228_v62 = vadd.f32 %v1212_v48, %v1132_v55  ;;  %v1361_v48 = vadd.s32 64, %v1353_v10 }
 0x1f3   : > { %1437 = vmatpush.msra.mxu2 %v1344_v45  ;;  %2024 = vmatpush.msra.mxu3 %v1344_v45  ;;  %v1102_v11 = vpop.permute.xlu2 %1101  ;;  %v1340_v19 = vmul.f32 %v2854_v15, %v1228_v62  ;;  %v1350_v15 = vstv %s1941_s30  ;;  %v1028_v45 = vld [vmem:[%s2539_s24] sm:$0xff] }
 0x1f4   : > { %v1135_v20 = vmul.f32 %v1102_v11, %v1039_v14 }
 0x1f6   : > { %v1178_v6 = vpop.permute.xlu0 %1177 }
 0x1f7   : > { %v1213_v34 = vmul.f32 %v1178_v6, %v593_v50  ;;  %v1351_v50 = vsub.s32 %v1348_v4, %v1350_v15  ;;  %v1265_v6 = vpop.permute.xlu1 %1264  ;;  %v1424_v15 = vld [vmem:[%s2550_s7 + $0x30] sm:$0xff] }
 0x1f9   : > { %v1229_v52 = vadd.f32 %v1213_v34, %v1133_v36  ;;  %v1369_v29 = vperm.slane %v1351_v50, 0  ;;  %v1359_v34 = vadd.s32 48, %v1353_v10  ;;  %v1368_v36 = vadd.s32 120, %v1353_v10 }
 0x1fb   : > { %v1052_v41 = vpop.permute.xlu2 %1051  ;;  %vm1370_vm0 = vcmp.eq.s32.totalorder %v1353_v10, %v1369_v29  ;;  %vm1371_vm1 = vcmp.eq.s32.totalorder %v1354_v0, %v1369_v29  ;;  %vm1373_vm3 = vcmp.eq.s32.totalorder %v1356_v60, %v1369_v29  ;;  %vm1376_vm8 = vcmp.eq.s32.totalorder %v1359_v34, %v1369_v29  ;;  %v1552_v0 = vld [vmem:[%s2523_s19 + $0x10] sm:$0xff] (%p2529_p3)  ;;  %v1557_v34 = vld [vmem:[%s2523_s19 + $0x38] sm:$0xff] (%p2529_p3) }
 0x1fc   : > { %vm1377_vm10 = vcmp.eq.s32.totalorder %v1360_v44, %v1369_v29  ;;  %vm1385_vm11 = vcmp.eq.s32.totalorder %v1368_v36, %v1369_v29  ;;  %vm1378_vm12 = vcmp.eq.s32.totalorder %v1361_v48, %v1369_v29  ;;  %vm1381_vm15 = vcmp.eq.s32.totalorder %v1364_v51, %v1369_v29  ;;  %v1561_v44 = vld [vmem:[%s2523_s19 + $0x58] sm:$0xff] (%p2529_p3)  ;;  %v1560_v36 = vld [vmem:[%s2523_s19 + $0x50] sm:$0xff] (%p2529_p3)  ;;  %v1559_v48 = vld [vmem:[%s2523_s19 + $0x48] sm:$0xff] (%p2529_p3) }
 0x1fd   : > { %v2339_v60 = vmov (%p2529_p3), 0   ;;  %v1562_v51 = vld [vmem:[%s2523_s19 + $0x60] sm:$0xff] (%p2529_p3) }
 0x1fe   : > { %v1182_v9 = vpop.permute.xlu0 %1181  ;;  %2195 = vset.pattern.permute.xlu2 (%p2529_p3), %v2339_v60  ;;  %2194 = vset.pattern.permute.xlu1 (%p2529_p3), %v2339_v60 }
 0x1ff   : > { %v1214_v16 = vmul.f32 %v1182_v9, %v596_v3  ;;  %2193 = vset.pattern.permute.xlu0 (%p2529_p3), %v2339_v60  ;;  %1578 = vperm.xlu1 (%p2529_p3), %2194, %v1552_v0  }
 0x201   : > { %v1230_v23 = vadd.f32 %v1214_v16, %v1134_v37  ;;  %v1355_v16 = vadd.s32 16, %v1353_v10  ;;  %v1358_v37 = vadd.s32 40, %v1353_v10 }
 0x203   : > { %v1342_v33 = vmul.f32 %v2843_v1, %v1230_v23  ;;  %v1339_v1 = vmul.f32 %v2862_v27, %v1227_v43  ;;  %v1047_v39 = vpop.permute.xlu2 %1046  ;;  %v1337_v27 = vmul.f32 %v1280_v7, %v2856_v24  ;;  %v1222_v24 = vadd.f32 %v1206_v22, %v1126_v59  ;;  %v1422_v43 = vld [vmem:[%s2550_s7 + $0x20] sm:$0xff] }
 0x204   : > { %vm1372_vm2 = vcmp.eq.s32.totalorder %v1355_v16, %v1369_v29  ;;  %vm1375_vm6 = vcmp.eq.s32.totalorder %v1358_v37, %v1369_v29  ;;  %v1362_v23 = vadd.s32 72, %v1353_v10  ;;  %v1550_v16 = vld [vmem:[%s2523_s19] sm:$0xff] (%p2529_p3)  ;;  %v1551_v37 = vld [vmem:[%s2523_s19 + $0x8] sm:$0xff] (%p2529_p3) }
 0x205   : > { %v1334_v7 = vmul.f32 %v1265_v6, %v1222_v24  ;;  %1568 = vperm.xlu0 (%p2529_p3), %2193, %v1550_v16  }
 0x206   : > { %v1186_v18 = vpop.permute.xlu0 %1185  ;;  %vm1379_vm13 = vcmp.eq.s32.totalorder %v1362_v23, %v1369_v29  ;;  %v1564_v23 = vld [vmem:[%s2523_s19 + $0x70] sm:$0xff] (%p2529_p3) }
 0x207   : > { %v1215_v40 = vmul.f32 %v1186_v18, %v598_v17  ;;  %v1357_v17 = vadd.s32 32, %v1353_v10  ;;  %v1365_v18 = vadd.s32 96, %v1353_v10 }
 0x209   : > { %v1231_v49 = vadd.f32 %v1215_v40, %v1135_v20  ;;  %vm1374_vm4 = vcmp.eq.s32.totalorder %v1357_v17, %v1369_v29  ;;  %vm1382_vm5 = vcmp.eq.s32.totalorder %v1365_v18, %v1369_v29  ;;  %v1366_v20 = vadd.s32 104, %v1353_v10  ;;  %v1555_v17 = vld [vmem:[%s2523_s19 + $0x28] sm:$0xff] (%p2529_p3)  ;;  %v1553_v18 = vld [vmem:[%s2523_s19 + $0x18] sm:$0xff] (%p2529_p3) }
 0x20a   : > { %v1367_v40 = vadd.s32 112, %v1353_v10  ;;  %1583 = vperm.xlu1 (%p2529_p3), %2194, %v1553_v18  }
 0x20b   : > { %v1343_v56 = vmul.f32 %v2836_v31, %v1231_v49  ;;  %v1341_v31 = vmul.f32 %v2851_v12, %v1229_v52  ;;  %v1029_v12 = vld [vmem:[%s2539_s24 + $0x8] sm:$0xff]  ;;  %v1260_v9 = vpop.permute.xlu2 %1259  ;;  %vm1383_vm7 = vcmp.eq.s32.totalorder %v1366_v20, %v1369_v29  ;;  %v1363_v49 = vadd.s32 80, %v1353_v10  ;;  %v1558_v20 = vld [vmem:[%s2523_s19 + $0x40] sm:$0xff] (%p2529_p3) }
 0x20c   : > { %v1125_v35 = vmul.f32 %v1052_v41, %v1029_v12  ;;  %vm1384_vm9 = vcmp.eq.s32.totalorder %v1367_v40, %v1369_v29  ;;  %v1418_v41 = vld [vmem:[%s2550_s7] sm:$0xff]  ;;  %v1419_v52 = vld [vmem:[%s2550_s7 + $0x8] sm:$0xff]  ;;  %v1556_v40 = vld [vmem:[%s2523_s19 + $0x30] sm:$0xff] (%p2529_p3) }
 0x20d   : > { %1438 = vmatpush.msra.mxu2 %v1343_v56  ;;  %2025 = vmatpush.msra.mxu3 %v1343_v56  ;;  %vm1380_vm14 = vcmp.eq.s32.totalorder %v1363_v49, %v1369_v29  ;;  %v1431_v12 = vld [vmem:[%s2550_s7 + $0x68] sm:$0xff]  ;;  %v1428_v29 = vld [vmem:[%s2550_s7 + $0x50] sm:$0xff] }
 0x20e   : > { %v1146_v63 = vpop.permute.xlu0 %1145  ;;  %1573 = vperm.xlu0 (%p2529_p3), %2193, %v1551_v37   ;;  %v1563_v49 = vld [vmem:[%s2523_s19 + $0x68] sm:$0xff] (%p2529_p3) }
 0x20f   : > { %1439 = vmatpush.msra.mxu2 %v1342_v33  ;;  %2026 = vmatpush.msra.mxu3 %v1342_v33  ;;  %v1205_v38 = vmul.f32 %v1146_v63, %v2823_v26  ;;  %v1124_v26 = vmul.f32 %v1047_v39, %v1028_v45  ;;  %v1421_v33 = vld [vmem:[%s2550_s7 + $0x18] sm:$0xff]  ;;  %v1423_v39 = vld [vmem:[%s2550_s7 + $0x28] sm:$0xff] }
 0x211   : > { %1440 = vmatpush.msra.mxu2 %v1341_v31  ;;  %2027 = vmatpush.msra.mxu3 %v1341_v31  ;;  %v1221_v28 = vadd.f32 %v1205_v38, %v1125_v35  ;;  %v1432_v38 = vld [vmem:[%s2550_s7 + $0x70] sm:$0xff]  ;;  %v1425_v35 = vld [vmem:[%s2550_s7 + $0x38] sm:$0xff] }
 0x212   : > { %1603 = vperm.xlu1 (%p2529_p3), %2194, %v1557_v34  }
 0x213   : > { %1441 = vmatpush.msra.mxu2 %v1340_v19  ;;  %2028 = vmatpush.msra.mxu3 %v1340_v19  ;;  %v1333_v14 = vmul.f32 %v1260_v9, %v1221_v28 }
 0x215   : > { %1442 = vmatpush.msra.mxu2 %v1339_v1  ;;  %2029 = vmatpush.msra.mxu3 %v1339_v1 }
 0x216   : > { %v1142_v42 = vpop.permute.xlu0 %1141  ;;  %1598 = vperm.xlu0 (%p2529_p3), %2193, %v1556_v40  }
 0x217   : > { %1443 = vmatpush.msra.mxu2 %v1338_v2  ;;  %2030 = vmatpush.msra.mxu3 %v1338_v2  ;;  %v1204_v3 = vmul.f32 %v1142_v42, %v2810_v5  ;;  %v2338_v5 = vmov 1.0  }
 0x219   : > { %1444 = vmatpush.msra.mxu2 %v1337_v27  ;;  %2031 = vmatpush.msra.mxu3 %v1337_v27  ;;  %v1220_v11 = vadd.f32 %v1204_v3, %v1124_v26  ;;  %v1427_v26 = vld [vmem:[%s2550_s7 + $0x48] sm:$0xff] }
 0x21a   : > { %1618 = vperm.xlu1 (%p2529_p3), %2194, %v1560_v36  }
 0x21b   : > { %1445 = vmatpush.msra.mxu2 %v1336_v30  ;;  %2032 = vmatpush.msra.mxu3 %v1336_v30 }
 0x21d   : > { %1446 = vmatpush.msra.mxu2 %v1335_v47  ;;  %2033 = vmatpush.msra.mxu3 %v1335_v47  ;;  %v1426_v47 = vld [vmem:[%s2550_s7 + $0x40] sm:$0xff] }
 0x21e   : > { %1613 = vperm.xlu0 (%p2529_p3), %2193, %v1559_v48  }
 0x21f   : > { %v1255_v13 = vpop.permute.xlu0 %1254  ;;  %1447 = vmatpush.msra.mxu2 %v1334_v7  ;;  %2034 = vmatpush.msra.mxu3 %v1334_v7 }
 0x220   : > { %v1332_v8 = vmul.f32 %v1255_v13, %v1220_v11  ;;  %v1429_v13 = vld [vmem:[%s2550_s7 + $0x58] sm:$0xff] }
 0x221   : > { %1448 = vmatpush.msra.mxu2 %v1333_v14  ;;  %2035 = vmatpush.msra.mxu3 %v1333_v14 }
 0x222   : > { %1633 = vperm.xlu1 (%p2529_p3), %2194, %v1563_v49  }
 0x223   : > { %1449 = vmatpush.msra.mxu2 %v1332_v8  ;;  %2036 = vmatpush.msra.mxu3 %v1332_v8 }
 0x224   : > { %1958 = vmatmul.msk.f32.vlgmr.msra.gmra.mxu2 %vm1370_vm0, %v2338_v5  ;;  %1970 = vmatmul.msk.f32.vlgmr.msra.gmra.mxu3 %vm1382_vm5, %v2338_v5 }
 0x226   : > { %1628 = vperm.xlu0 (%p2529_p3), %2193, %v1562_v51  }
 0x22c   : > { %1959 = vmatmul.msk.f32.gmra.mxu2 %vm1371_vm1, %v2338_v5  ;;  %1971 = vmatmul.msk.f32.gmra.mxu3 %vm1383_vm7, %v2338_v5 }
 0x234   : > { %1960 = vmatmul.msk.f32.gmra.mxu2 %vm1372_vm2, %v2338_v5  ;;  %1972 = vmatmul.msk.f32.gmra.mxu3 %vm1384_vm9, %v2338_v5 }
 0x23c   : > { %1961 = vmatmul.msk.f32.gmra.mxu2 %vm1373_vm3, %v2338_v5  ;;  %1973 = vmatmul.msk.f32.gmra.mxu3 %vm1385_vm11, %v2338_v5 }
 0x244   : > { %1962 = vmatmul.msk.f32.gmra.mxu2 %vm1374_vm4, %v2338_v5 }
 0x24c   : > { %1963 = vmatmul.msk.f32.gmra.mxu2 %vm1375_vm6, %v2338_v5 }
 0x254   : > { %1964 = vmatmul.msk.f32.gmra.mxu2 %vm1376_vm8, %v2338_v5 }
 0x25c   : > { %1965 = vmatmul.msk.f32.gmra.mxu2 %vm1377_vm10, %v2338_v5 }
 0x264   : > { %1966 = vmatmul.msk.f32.gmra.mxu2 %vm1378_vm12, %v2338_v5 }
 0x26c   : > { %1967 = vmatmul.msk.f32.gmra.mxu2 %vm1379_vm13, %v2338_v5 }
 0x274   : > { %1968 = vmatmul.msk.f32.gmra.mxu2 %vm1380_vm14, %v2338_v5 }
 0x27c   : > { %1969 = vmatmul.msk.f32.gmra.mxu2 %vm1381_vm15, %v2338_v5  ;;  %v1554_v5 = vld [vmem:[%s2523_s19 + $0x20] sm:$0xff] (%p2529_p3) }
 0x27d   : > { %1588 = vperm.xlu2 (%p2529_p3), %2195, %v1554_v5  }
 0x285   : > { %1593 = vperm.xlu2 (%p2529_p3), %2195, %v1555_v17  }
 0x28d   : > { %1608 = vperm.xlu2 (%p2529_p3), %2195, %v1558_v20  }
 0x295   : > { %1623 = vperm.xlu2 (%p2529_p3), %2195, %v1561_v44  }
 0x29d   : > { %1638 = vperm.xlu2 (%p2529_p3), %2195, %v1564_v23  }
 0x2a7   : > { %v1451_v54 = vpop.f32.mrf.mxu2  ;;  %v1487_v19 = vpop.f32.mrf.mxu3 }
 0x2a8   : > { %v1499_v55 = vadd.f32 %v1451_v54, %v1418_v41  ;;  %v1511_v1 = vadd.f32 %v1487_v19, %v1430_v25  ;;  %v1565_v41 = vld [vmem:[%s2523_s19 + $0x78] sm:$0xff] (%p2529_p3)  ;;  %v1579_v25 = vpop.permute.xlu1 (%p2529_p3), %1578  ;;  %v1569_v19 = vpop.permute.xlu0 (%p2529_p3), %1568 }
 0x2a9   : > { %1643 = vperm.xlu0 (%p2529_p3), %2193, %v1565_v41  }
 0x2aa   : > { %1515 = vst [vmem:[%s2550_s7] sm:$0xff] %v1499_v55 }
 0x2ab   : > { %1527 = vst [vmem:[%s2550_s7 + $0x60] sm:$0xff] %v1511_v1 }
 0x2af   : > { %v1454_v56 = vpop.f32.mrf.mxu2  ;;  %v1490_v42 = vpop.f32.mrf.mxu3 }
 0x2b0   : > { %v1500_v57 = vadd.f32 %v1454_v56, %v1419_v52  ;;  %v1512_v4 = vadd.f32 %v1490_v42, %v1431_v12 }
 0x2b2   : > { %1516 = vst [vmem:[%s2550_s7 + $0x8] sm:$0xff] %v1500_v57 }
 0x2b3   : > { %1528 = vst [vmem:[%s2550_s7 + $0x68] sm:$0xff] %v1512_v4 }
 0x2b7   : > { %v1457_v61 = vpop.f32.mrf.mxu2  ;;  %v1493_v59 = vpop.f32.mrf.mxu3 }
 0x2b8   : > { %v1501_v62 = vadd.f32 %v1457_v61, %v1420_v58  ;;  %v1513_v30 = vadd.f32 %v1493_v59, %v1432_v38 }
 0x2b9   : > { %v1535_v12 = vld [vmem:[%s2550_s7 + $0x8] sm:$0xff] (%p2529_p3) }
 0x2ba   : > { %1517 = vst [vmem:[%s2550_s7 + $0x10] sm:$0xff] %v1501_v62 }
 0x2bb   : > { %1529 = vst [vmem:[%s2550_s7 + $0x70] sm:$0xff] %v1513_v30 }
 0x2bf   : > { %v1460_v63 = vpop.f32.mrf.mxu2  ;;  %v1496_v6 = vpop.f32.mrf.mxu3 }
 0x2c0   : > { %v1502_v32 = vadd.f32 %v1460_v63, %v1421_v33  ;;  %v1514_v3 = vadd.f32 %v1496_v6, %v1433_v53 }
 0x2c2   : > { %1518 = vst [vmem:[%s2550_s7 + $0x18] sm:$0xff] %v1502_v32  ;;  %v1536_v32 = vld [vmem:[%s2550_s7 + $0x10] sm:$0xff] (%p2529_p3) }
 0x2c3   : > { %1530 = vst [vmem:[%s2550_s7 + $0x78] sm:$0xff] %v1514_v3  ;;  %v1648_v1 = vmul.f32 (%p2529_p3), %v1579_v25, %v1536_v32 }
 0x2c5   : > { %1664 = vst [vmem:[%s2550_s7 + $0x10] sm:$0xff] (%p2529_p3), %v1648_v1 }
 0x2c7   : > { %v1463_v31 = vpop.f32.mrf.mxu2 }
 0x2c8   : > { %v1503_v46 = vadd.f32 %v1463_v31, %v1422_v43  ;;  %v1534_v43 = vld [vmem:[%s2550_s7] sm:$0xff] (%p2529_p3) }
 0x2ca   : > { %1519 = vst [vmem:[%s2550_s7 + $0x20] sm:$0xff] %v1503_v46 }
 0x2cf   : > { %v1466_v21 = vpop.f32.mrf.mxu2 }
 0x2d0   : > { %v1504_v2 = vadd.f32 %v1466_v21, %v1423_v39  ;;  %v1646_v39 = vmul.f32 (%p2529_p3), %v1569_v19, %v1534_v43  ;;  %v1548_v21 = vld [vmem:[%s2550_s7 + $0x70] sm:$0xff] (%p2529_p3) }
 0x2d1   : > { %v1538_v54 = vld [vmem:[%s2550_s7 + $0x20] sm:$0xff] (%p2529_p3) }
 0x2d2   : > { %1520 = vst [vmem:[%s2550_s7 + $0x28] sm:$0xff] %v1504_v2  ;;  %v1537_v2 = vld [vmem:[%s2550_s7 + $0x18] sm:$0xff] (%p2529_p3) }
 0x2d3   : > { %1662 = vst [vmem:[%s2550_s7] sm:$0xff] (%p2529_p3), %v1646_v39 }
 0x2d7   : > { %v1469_v22 = vpop.f32.mrf.mxu2  ;;  %v1589_v55 = vpop.permute.xlu2 (%p2529_p3), %1588 }
 0x2d8   : > { %v1505_v27 = vadd.f32 %v1469_v22, %v1424_v15  ;;  %v1650_v52 = vmul.f32 (%p2529_p3), %v1589_v55, %v1538_v54  ;;  %v1584_v15 = vpop.permute.xlu1 (%p2529_p3), %1583  ;;  %v1574_v22 = vpop.permute.xlu0 (%p2529_p3), %1573 }
 0x2d9   : > { %v1539_v56 = vld [vmem:[%s2550_s7 + $0x28] sm:$0xff] (%p2529_p3)  ;;  %v1647_v38 = vmul.f32 (%p2529_p3), %v1574_v22, %v1535_v12 }
 0x2da   : > { %1521 = vst [vmem:[%s2550_s7 + $0x30] sm:$0xff] %v1505_v27  ;;  %v1649_v27 = vmul.f32 (%p2529_p3), %v1584_v15, %v1537_v2 }
 0x2db   : > { %1666 = vst [vmem:[%s2550_s7 + $0x20] sm:$0xff] (%p2529_p3), %v1650_v52 }
 0x2dc   : > { %1665 = vst [vmem:[%s2550_s7 + $0x18] sm:$0xff] (%p2529_p3), %v1649_v27 }
 0x2dd   : > { %1663 = vst [vmem:[%s2550_s7 + $0x8] sm:$0xff] (%p2529_p3), %v1647_v38 }
 0x2df   : > { %v1472_v45 = vpop.f32.mrf.mxu2  ;;  %v1594_v57 = vpop.permute.xlu2 (%p2529_p3), %1593 }
 0x2e0   : > { %v1506_v50 = vadd.f32 %v1472_v45, %v1425_v35  ;;  %v1651_v58 = vmul.f32 (%p2529_p3), %v1594_v57, %v1539_v56  ;;  %v1604_v35 = vpop.permute.xlu1 (%p2529_p3), %1603  ;;  %v1599_v45 = vpop.permute.xlu0 (%p2529_p3), %1598 }
 0x2e1   : > { %v1540_v30 = vld [vmem:[%s2550_s7 + $0x30] sm:$0xff] (%p2529_p3) }
 0x2e2   : > { %1522 = vst [vmem:[%s2550_s7 + $0x38] sm:$0xff] %v1506_v50  ;;  %v1652_v53 = vmul.f32 (%p2529_p3), %v1599_v45, %v1540_v30 }
 0x2e3   : > { %1667 = vst [vmem:[%s2550_s7 + $0x28] sm:$0xff] (%p2529_p3), %v1651_v58 }
 0x2e4   : > { %1668 = vst [vmem:[%s2550_s7 + $0x30] sm:$0xff] (%p2529_p3), %v1652_v53 }
 0x2e7   : > { %v1475_v24 = vpop.f32.mrf.mxu2  ;;  %v1609_v62 = vpop.permute.xlu2 (%p2529_p3), %1608 }
 0x2e8   : > { %v1507_v28 = vadd.f32 %v1475_v24, %v1426_v47  ;;  %v1619_v47 = vpop.permute.xlu1 (%p2529_p3), %1618  ;;  %v1614_v24 = vpop.permute.xlu0 (%p2529_p3), %1613 }
 0x2e9   : > { %v1541_v59 = vld [vmem:[%s2550_s7 + $0x38] sm:$0xff] (%p2529_p3) }
 0x2ea   : > { %1523 = vst [vmem:[%s2550_s7 + $0x40] sm:$0xff] %v1507_v28  ;;  %v1653_v50 = vmul.f32 (%p2529_p3), %v1604_v35, %v1541_v59 }
 0x2ec   : > { %1669 = vst [vmem:[%s2550_s7 + $0x38] sm:$0xff] (%p2529_p3), %v1653_v50 }
 0x2ef   : > { %v1478_v7 = vpop.f32.mrf.mxu2  ;;  %v1624_v31 = vpop.permute.xlu2 (%p2529_p3), %1623 }
 0x2f0   : > { %v1508_v10 = vadd.f32 %v1478_v7, %v1427_v26  ;;  %v1547_v7 = vld [vmem:[%s2550_s7 + $0x68] sm:$0xff] (%p2529_p3) }
 0x2f1   : > { %v1542_v61 = vld [vmem:[%s2550_s7 + $0x40] sm:$0xff] (%p2529_p3) }
 0x2f2   : > { %1524 = vst [vmem:[%s2550_s7 + $0x48] sm:$0xff] %v1508_v10  ;;  %v1654_v33 = vmul.f32 (%p2529_p3), %v1609_v62, %v1542_v61  ;;  %v1546_v10 = vld [vmem:[%s2550_s7 + $0x60] sm:$0xff] (%p2529_p3) }
 0x2f4   : > { %1670 = vst [vmem:[%s2550_s7 + $0x40] sm:$0xff] (%p2529_p3), %v1654_v33 }
 0x2f7   : > { %v1481_v9 = vpop.f32.mrf.mxu2  ;;  %v1639_v42 = vpop.permute.xlu2 (%p2529_p3), %1638 }
 0x2f8   : > { %v1509_v11 = vadd.f32 %v1481_v9, %v1428_v29  ;;  %v1660_v4 = vmul.f32 (%p2529_p3), %v1639_v42, %v1548_v21  ;;  %v1634_v29 = vpop.permute.xlu1 (%p2529_p3), %1633  ;;  %v1629_v9 = vpop.permute.xlu0 (%p2529_p3), %1628 }
 0x2f9   : > { %v1543_v3 = vld [vmem:[%s2550_s7 + $0x48] sm:$0xff] (%p2529_p3) }
 0x2fa   : > { %1525 = vst [vmem:[%s2550_s7 + $0x50] sm:$0xff] %v1509_v11  ;;  %v1655_v26 = vmul.f32 (%p2529_p3), %v1614_v24, %v1543_v3  ;;  %v1659_v11 = vmul.f32 (%p2529_p3), %v1634_v29, %v1547_v7 }
 0x2fb   : > { %1676 = vst [vmem:[%s2550_s7 + $0x70] sm:$0xff] (%p2529_p3), %v1660_v4 }
 0x2fc   : > { %1671 = vst [vmem:[%s2550_s7 + $0x48] sm:$0xff] (%p2529_p3), %v1655_v26 }
 0x2fd   : > { %1675 = vst [vmem:[%s2550_s7 + $0x68] sm:$0xff] (%p2529_p3), %v1659_v11 }
 0x2fe   : > { %1533 = sbr.rel (!%p2529_p3) target bundleno = 799 (0x31f), region = 60 }
 0x2ff   : > { %v1484_v14 = vpop.f32.mrf.mxu2 }
 0x300   : > { %v1510_v8 = vadd.f32 %v1484_v14, %v1429_v13  ;;  %v1658_v13 = vmul.f32 (%p2529_p3), %v1629_v9, %v1546_v10  ;;  %v1549_v14 = vld [vmem:[%s2550_s7 + $0x78] sm:$0xff] (%p2529_p3) }
 0x301   : > { %v1544_v6 = vld [vmem:[%s2550_s7 + $0x50] sm:$0xff] (%p2529_p3) }
 0x302   : > { %1526 = vst [vmem:[%s2550_s7 + $0x58] sm:$0xff] %v1510_v8  ;;  %v1656_v28 = vmul.f32 (%p2529_p3), %v1619_v47, %v1544_v6 }
 0x303   : > { %1674 = vst [vmem:[%s2550_s7 + $0x60] sm:$0xff] %v1658_v13 }
 0x304   : > { %1672 = vst [vmem:[%s2550_s7 + $0x50] sm:$0xff] %v1656_v28 }
 0x309   : > { %v1545_v63 = vld [vmem:[%s2550_s7 + $0x58] sm:$0xff] }
 0x30a   : > { %v1657_v46 = vmul.f32 %v1624_v31, %v1545_v63 }
 0x30c   : > { %1673 = vst [vmem:[%s2550_s7 + $0x58] sm:$0xff] %v1657_v46 }
 0x31b   : > { %v1644_v8 = vpop.permute.xlu0 %1643 }
 0x31c   : > { %v1661_v5 = vmul.f32 %v1644_v8, %v1549_v14 }
 0x31e   : > { %1677 = vst [vmem:[%s2550_s7 + $0x78] sm:$0xff] %v1661_v5 }
 0x31f PF: > { %s2039_s1 = scalar_select %p2461_p11, [#allocation3], [#allocation8] }
 0x320   : > { %s3114_s15 = smov (!%p2461_p11, %s2424_s15), 0  ;;  %s1692_s19 = sshll.u32 %s2550_s7, 4  ;;  %s1693_s19 = int_to_ptr.vmem [resolvable:$true] %s1692_s19 }
 0x321   : > { %s1686_s23 = sld [smem:[%s2039_s1 + %s3114_s15]]  ;;  %s3093_s20 = sand.u32 1, %s2310_s10  }
 0x322   : > { %s3092_s29 = sld [smem:[#allocation18_spill]]  ;;  %s1679_s21 = scalar_lea.sflag [#allocation6], %s3093_s20 }
 0x327   : > { %s2004_s25 = sshll.u32 %s1686_s23, 7 }
 0x328   : > { %s1691_s28 = scalar_lea.hbm %s3092_s29, %s2004_s25  ;;  %s2258_s7 = scalar_lea.hbm %s3092_s29, 256 }
 0x329   : > { %s1694_s16 = sshll.u32 %s1691_s28, 4  ;;  %s1695_s16 = int_to_ptr.hbm [resolvable:$true] %s1694_s16 }
 0x32a   : > { %s2252_s12 = sshra.s32 %s1695_s16, 4  ;;  %s2253_s12 = int_to_ptr.hbm [resolvable:$true] %s2252_s12 }
 0x32b   : > { %s2254_s17 = scalar_lea.hbm %s2253_s12, 128  ;;  %p2259_p1 = scmp.lt.s32.totalorder %s2253_s12, %s3092_s29 }
 0x32c   : > { %p2255_p4 = scmp.ne.s32.totalorder %s2253_s12, %s2254_s17  ;;  %p2260_p6 = scmp.lt.s32.totalorder %s2258_s7, %s2254_s17 }
 0x32e   : > { %p2256_p7 = pnand %p2255_p4, %p2461_p11  ;;  %p2261_p2 = por %p2260_p6, %p2259_p1 }
 0x330   : > { %p2257_p8 = pneg %p2256_p7 }
 0x332   : > { %p2262_p9 = pnand %p2261_p2, %p2257_p8 }
 0x334   : > { %2265 = shalt.err (!%p2262_p9)
}
 0x335   : > { %s2340_s22 = smov 128   ;;  %s2341_s1 = smov 8  }
 0x336   : > { %2041 = dma.vmem_to_hbm [thread:$0]  (%p2461_p11), %s1693_s19, 2048, %s1695_s16, %s1679_s21, %s2340_s22, %s2340_s22, %s2341_s1  }
 0x337 PF: > { %s3094_s23 = sld [smem:[#allocation12_spill]]  ;;  %p2052_p10 = scmp.ge.s32.totalorder %s2330_s14, 2 }
 0x339   : > { %p2048_p5 = pnand %p2052_p10, %p2466_p13 }
 0x33b   : > { %p2049_p12 = pneg %p2048_p5 }
 0x33d   : > { %s1709_s8 = sand.u32 1, %s3094_s23  }
 0x33e   : > { %s1710_s24 = scalar_lea.sflag [#allocation6], %s1709_s8 }
 0x33f   : > { %2301 = dma.done.wait (%p2049_p12), %s1710_s24, 2048  }
 0x340   : > { %2303 = vsyncadd (%p2049_p12), %s1710_s24, 4294965248  ;;  %s3096_s14 = sld [smem:[#allocation13_spill]]  ;;  %s3097_s28 = smov %s2476_s9 }
 0x341   : > { %s3098_s26 = sld [smem:[#allocation14_spill]]  ;;  %s3099_s9 = smov %s2310_s10 }
 0x342   : > { %s3100_s10 = smov %s2314_s11  ;;  %s3101_s11 = smov %s3097_s28 }
 0x343   : > { %s3102_s12 = smov %s2322_s13  ;;  %s3103_s13 = smov %s2326_s0 }
 0x346   : > { %p29_p11 = scmp.ge.s32.totalorder %s3096_s14, 7  }
 0x347   : > { %s3104_s0 = smov %s3098_s26 }
 0x348   :  { %31 = sbr.rel (!%p29_p11) target bundleno = 15 (0xf), region = 113 }
 0x34d   :  { %1716 = vsyncpa [#allocation5], 1 }
 0x34e   :  { %1718 = vsyncpa [#allocation5 + $0x1], 1 }
 0x34f   :  { %1719 = vsyncpa [#allocation6], 1 }
 0x350   :  { %1721 = vsyncpa [#allocation6 + $0x1], 1 }

</bundles_post_ra>
